<compile_context>
chip_gen: v7x
topology: tpu7x:2x2x1
jax: 0.10.0
libtpu: 0.0.40
codegen_flags: <defaults>
</compile_context>

<pallas_src>
import jax
import jax.numpy as jnp
import numpy as np
from jax.experimental import pallas as pl
from jax.experimental.pallas import tpu as pltpu

# ----------------------------- model config ---------------------------------
EMBEDDING_DIM = 16
HIDDEN_DIM = 32
VOCAB_SIZE = 50
NUM_LABELS = 4
BATCH_SIZE = 2
NUM_LAYERS = 2
SEQ_LEN = 8

# MXU operand dtype for the LSTM matmuls (state / elementwise math stays f32).
# jnp.bfloat16 -> single-pass vmatmul on v6e/v7x; jnp.float32 -> exact path.
MXU_DTYPE = jnp.bfloat16

# Packed weight-slab row offsets (rows of the (R_TOTAL, 8H) weight blob).
_R_IH0 = 0                                   # (2E, 8H) block-diag, interleaved gates
_R_HH0 = _R_IH0 + 2 * EMBEDDING_DIM          # (2H, 8H) block-diag, interleaved gates
_R_IH1 = _R_HH0 + 2 * HIDDEN_DIM             # (2H, 8H) [fwd i,f,g,o | bwd i,f,g,o]
_R_HH1 = _R_IH1 + 2 * HIDDEN_DIM             # (H, 4H)  fwd i,f,g,o (lanes 0:4H)
_R_TOTAL = _R_HH1 + HIDDEN_DIM

# Small f32 slab rows: 0 = layer-0 bias, 1 = layer-1 bias, 2 = head bias,
# rows 8 : 8+2H = head weight (2H, L) in lanes 0:L.
_S_HEADW = 8
_S_TOTAL = _S_HEADW + 2 * HIDDEN_DIM


# ----------------------------- fused Pallas kernel --------------------------
def lstm_classifier_kernel(
    x_ref,      # (T*BP, 2E)   row t*BP+b = [x_t(b) | x_{T-1-t}(b)], MXU dtype
    w_ref,      # (_R_TOTAL, 8H) packed matmul weights, MXU dtype
    s_ref,      # (_S_TOTAL, 8H) f32: biases + head weight/bias
    out_ref,    # (BP, L)      log-probs (padded rows are garbage, sliced off)
    hs0_ref,    # scratch (T*BP, 2H): layer-0 outputs, fwd lanes [:H], bwd [H:]
):
    H = HIDDEN_DIM
    L = NUM_LABELS
    BP = out_ref.shape[0]
    T = x_ref.shape[0] // BP
    mx = w_ref.dtype
    f32 = jnp.float32

    def dot(a, b):
        return jnp.dot(a.astype(mx), b, preferred_element_type=f32)

    # Static one-time slices of the packed slabs (off the serial chain).
    w_ih0 = w_ref[_R_IH0:_R_HH0, :]           # (2E, 8H)
    w_hh0 = w_ref[_R_HH0:_R_IH1, :]           # (2H, 8H)
    w_ih1 = w_ref[_R_IH1:_R_HH1, :]           # (2H, 8H)
    w_hh1 = w_ref[_R_HH1:_R_TOTAL, 0:4 * H]   # (H, 4H)
    b0 = s_ref[0:1, :]                        # (1, 8H) interleaved gate order
    b1 = s_ref[1:2, :]                        # (1, 8H) [fwd i,f,g,o | bwd i,f,g,o]
    head_b = s_ref[2:3, 0:L]                  # (1, L)
    head_w = s_ref[_S_HEADW:_S_HEADW + 2 * H, 0:L]   # (2H, L)

    def cell_bd(gates, c):
        # Fused fwd+bwd cell.  gates: (BP, 8H) lanes [i_f,i_b|f_f,f_b|g_f,g_b|o_f,o_b];
        # c: (BP, 2H) = [c_f | c_b].  Full-width nonlinearities, static lane slices.
        s = jax.nn.sigmoid(gates)
        th = jnp.tanh(gates)
        i = s[:, 0 * 2 * H:1 * 2 * H]
        f = s[:, 1 * 2 * H:2 * 2 * H]
        g = th[:, 2 * 2 * H:3 * 2 * H]
        o = s[:, 3 * 2 * H:4 * 2 * H]
        c = f * c + i * g
        return o * jnp.tanh(c), c             # h = [h_f | h_b]

    def cell(gates, c):
        # Single-direction cell, PyTorch gate order [i, f, g, o].
        s = jax.nn.sigmoid(gates)
        th = jnp.tanh(gates)
        c = s[:, H:2 * H] * c + s[:, 0:H] * th[:, 2 * H:3 * H]
        return s[:, 3 * H:4 * H] * jnp.tanh(c), c

    x = x_ref[...]                                        # (T*BP, 2E)

    # ---- layer 0: both directions fused, input projection hoisted ----------
    gx0 = dot(x, w_ih0) + b0                              # (T*BP, 8H) fwd(t) | bwd(T-1-t)

    h_cat, c_cat = cell_bd(gx0[0:BP], jnp.zeros((BP, 2 * H), f32))   # t=0: h0==0, no W_hh dot
    hs0_ref[0:BP, 0:H] = h_cat[:, 0:H]                    # fwd h(0)
    hs0_ref[(T - 1) * BP:T * BP, H:2 * H] = h_cat[:, H:2 * H]        # bwd h(T-1)
    for t in range(1, T):                                 # fully unrolled, static offsets
        r = T - 1 - t
        g = gx0[t * BP:(t + 1) * BP] + dot(h_cat, w_hh0)  # ONE fused recurrent dot
        h_cat, c_cat = cell_bd(g, c_cat)
        hs0_ref[t * BP:(t + 1) * BP, 0:H] = h_cat[:, 0:H]
        hs0_ref[r * BP:(r + 1) * BP, H:2 * H] = h_cat[:, H:2 * H]

    # ---- layer 1 ------------------------------------------------------------
    hs0 = hs0_ref[...]                                    # (T*BP, 2H): concat is free
    gx1 = dot(hs0, w_ih1) + b1                            # (T*BP, 8H) hoisted

    h1, c1 = cell(gx1[0:BP, 0:4 * H], jnp.zeros((BP, H), f32))       # fwd t=0, no W_hh dot
    for t in range(1, T):
        g = gx1[t * BP:(t + 1) * BP, 0:4 * H] + dot(h1, w_hh1)
        h1, c1 = cell(g, c1)

    # Backward half of lstm_out[-1] is the FIRST backward step (h0 = c0 = 0),
    # so one cell update on the last timestep (no W_hh dot) suffices.
    h1b, _ = cell(gx1[(T - 1) * BP:T * BP, 4 * H:8 * H], jnp.zeros((BP, H), f32))

    # ---- head: hidden2label + log_softmax (W split to avoid a lane concat) --
    logits = (jnp.dot(h1, head_w[0:H], preferred_element_type=f32)
              + jnp.dot(h1b, head_w[H:2 * H], preferred_element_type=f32)
              + head_b)
    m = jnp.max(logits, axis=1, keepdims=True)
    z = logits - m
    out_ref[...] = z - jnp.log(jnp.sum(jnp.exp(z), axis=1, keepdims=True))


# ----------------------------- wrapper ---------------------------------------
_VMEM = pl.BlockSpec(memory_space=pltpu.MemorySpace.VMEM)


def lstm_classifier_forward(params, sentence):
    """sentence: (T, B) int32 token ids -> (B, NUM_LABELS) log-probs."""
    T, B = sentence.shape
    BP = max(8, ((B + 7) // 8) * 8)              # pad batch to the 8-sublane tile
    # Embedding gather stays in XLA (tiny); everything else is one fused kernel.
    emb = params["embedding"][sentence].astype(jnp.float32)          # (T, B, E)
    x = jnp.zeros((T, BP, EMBEDDING_DIM), jnp.float32).at[:, :B].set(emb)
    # Pack [x_t | x_{T-1-t}] so the fused fwd/bwd input projection is one matmul
    # (the bwd time reversal is folded into the packing, off the serial chain).
    x_packed = jnp.concatenate([x, x[::-1]], axis=-1).reshape(T * BP, 2 * EMBEDDING_DIM)
    out = pl.pallas_call(
        lstm_classifier_kernel,
        out_shape=jax.ShapeDtypeStruct((BP, NUM_LABELS), jnp.float32),
        in_specs=[_VMEM, _VMEM, _VMEM],
        out_specs=_VMEM,
        scratch_shapes=[pltpu.VMEM((T * BP, 2 * HIDDEN_DIM), jnp.float32)],
    )(x_packed.astype(MXU_DTYPE), params["w_blob"], params["s_blob"])
    return out[:B]


# ----------------------------- pure-JAX reference ----------------------------
def _lstm_dir_ref(x, w_ih_t, w_hh_t, b, h0, c0, mx):
    H = h0.shape[-1]
    w_ih_t = w_ih_t.astype(mx)
    w_hh_t = w_hh_t.astype(mx)

    def step(carry, x_t):
        h, c = carry
        gates = (jnp.dot(x_t.astype(mx), w_ih_t, preferred_element_type=jnp.float32)
                 + jnp.dot(h.astype(mx), w_hh_t, preferred_element_type=jnp.float32)
                 + b)
        i = jax.nn.sigmoid(gates[:, :H])
        f = jax.nn.sigmoid(gates[:, H:2 * H])
        g = jnp.tanh(gates[:, 2 * H:3 * H])
        o = jax.nn.sigmoid(gates[:, 3 * H:])
        c = f * c + i * g
        h = o * jnp.tanh(c)
        return (h, c), h

    _, hs = jax.lax.scan(step, (h0, c0), x)
    return hs


def lstm_classifier_reference(params, sentence, mx=jnp.float32):
    x = params["embedding"][sentence].astype(jnp.float32)  # (T, B, E)
    B = sentence.shape[1]
    h0 = jnp.zeros((B, HIDDEN_DIM), jnp.float32)
    c0 = jnp.zeros((B, HIDDEN_DIM), jnp.float32)
    for wih, whh, b in (
        (params["l0_wih"], params["l0_whh"], params["l0_b"]),
        (params["l1_wih"], params["l1_whh"], params["l1_b"]),
    ):
        out_f = _lstm_dir_ref(x, wih[0], whh[0], b[0], h0, c0, mx)
        out_b = _lstm_dir_ref(x[::-1], wih[1], whh[1], b[1], h0, c0, mx)[::-1]
        x = jnp.concatenate([out_f, out_b], axis=-1)
    logits = x[-1] @ params["head_w"] + params["head_b"]
    return jax.nn.log_softmax(logits, axis=1)


# ----------------------------- parameter init / packing ----------------------
def init_params(key):
    H = HIDDEN_DIM
    k_emb, k_lstm, k_head = jax.random.split(key, 3)
    params = {
        # nn.Embedding: N(0, 1)
        "embedding": jax.random.normal(k_emb, (VOCAB_SIZE, EMBEDDING_DIM), jnp.float32)
    }

    # nn.LSTM weights: U(-1/sqrt(H), 1/sqrt(H)); gate order (i, f, g, o).
    k = 1.0 / np.sqrt(H)
    keys = jax.random.split(k_lstm, NUM_LAYERS * 2 * 4)
    ki = 0
    for layer in range(NUM_LAYERS):
        d_in = EMBEDDING_DIM if layer == 0 else 2 * H
        wih, whh, bias = [], [], []
        for _direction in range(2):
            w_ih = jax.random.uniform(keys[ki], (4 * H, d_in), jnp.float32, -k, k)
            w_hh = jax.random.uniform(keys[ki + 1], (4 * H, H), jnp.float32, -k, k)
            b_ih = jax.random.uniform(keys[ki + 2], (4 * H,), jnp.float32, -k, k)
            b_hh = jax.random.uniform(keys[ki + 3], (4 * H,), jnp.float32, -k, k)
            ki += 4
            wih.append(w_ih.T)                    # (d_in, 4H)
            whh.append(w_hh.T)                    # (H, 4H)
            bias.append((b_ih + b_hh)[None, :])   # (1, 4H)  (b_ih + b_hh folded once)
        params[f"l{layer}_wih"] = jnp.stack(wih)
        params[f"l{layer}_whh"] = jnp.stack(whh)
        params[f"l{layer}_b"] = jnp.stack(bias)

    # nn.Linear(2H, L): U(-1/sqrt(2H), 1/sqrt(2H))
    kl = 1.0 / np.sqrt(2 * H)
    kw, kb = jax.random.split(k_head)
    w = jax.random.uniform(kw, (NUM_LABELS, 2 * H), jnp.float32, -kl, kl)
    b = jax.random.uniform(kb, (NUM_LABELS,), jnp.float32, -kl, kl)
    params["head_w"] = w.T                        # (2H, L)
    params["head_b"] = b[None, :]                 # (1, L)

    # ---- pack the two kernel slabs (consolidated DMAs) ----------------------
    def blockdiag_interleaved(w_f, w_b):
        # w_f: (d_f, 4H), w_b: (d_b, 4H), columns in [i,f,g,o] order.
        # -> (d_f+d_b, 8H), block-diagonal, columns [i_f,i_b|f_f,f_b|g_f,g_b|o_f,o_b].
        d_f, d_b = w_f.shape[0], w_b.shape[0]
        out = np.zeros((d_f + d_b, 8 * H), np.float32)
        for gi in range(4):
            out[:d_f, (2 * gi) * H:(2 * gi + 1) * H] = w_f[:, gi * H:(gi + 1) * H]
            out[d_f:, (2 * gi + 1) * H:(2 * gi + 2) * H] = w_b[:, gi * H:(gi + 1) * H]
        return out

    def interleave_lanes(v_f, v_b):
        out = np.zeros((1, 8 * H), np.float32)
        for gi in range(4):
            out[0, (2 * gi) * H:(2 * gi + 1) * H] = v_f[0, gi * H:(gi + 1) * H]
            out[0, (2 * gi + 1) * H:(2 * gi + 2) * H] = v_b[0, gi * H:(gi + 1) * H]
        return out

    l0_wih = np.asarray(params["l0_wih"]); l0_whh = np.asarray(params["l0_whh"])
    l0_b = np.asarray(params["l0_b"])
    l1_wih = np.asarray(params["l1_wih"]); l1_whh = np.asarray(params["l1_whh"])
    l1_b = np.asarray(params["l1_b"])

    w_blob = np.zeros((_R_TOTAL, 8 * H), np.float32)
    w_blob[_R_IH0:_R_HH0] = blockdiag_interleaved(l0_wih[0], l0_wih[1])
    w_blob[_R_HH0:_R_IH1] = blockdiag_interleaved(l0_whh[0], l0_whh[1])
    w_blob[_R_IH1:_R_HH1] = np.concatenate([l1_wih[0], l1_wih[1]], axis=1)
    w_blob[_R_HH1:_R_TOTAL, 0:4 * H] = l1_whh[0]
    params["w_blob"] = jnp.asarray(w_blob).astype(MXU_DTYPE)

    s_blob = np.zeros((_S_TOTAL, 8 * H), np.float32)
    s_blob[0:1] = interleave_lanes(l0_b[0], l0_b[1])
    s_blob[1, 0:4 * H] = l1_b[0, 0]
    s_blob[1, 4 * H:8 * H] = l1_b[1, 0]
    s_blob[2, 0:NUM_LABELS] = np.asarray(params["head_b"])[0]
    s_blob[_S_HEADW:_S_HEADW + 2 * H, 0:NUM_LABELS] = np.asarray(params["head_w"])
    params["s_blob"] = jnp.asarray(s_blob)
    return params


# ----------------------------- main -------------------------------------------
if __name__ == "__main__":
    key = jax.random.PRNGKey(0)
    k_param, k_tok = jax.random.split(key)
    params = init_params(k_param)

    # sentence: (seq_len, batch) integer token ids
    sentence = jax.random.randint(
        k_tok, (SEQ_LEN, BATCH_SIZE), 0, VOCAB_SIZE, dtype=jnp.int32
    )

    out = jax.block_until_ready(jax.jit(lstm_classifier_forward)(params, sentence))
    assert out.shape == (BATCH_SIZE, NUM_LABELS)

    # Tight check vs a matched-precision reference (same MXU operand dtype),
    # plus a sanity check vs the exact-f32 PyTorch-semantics reference.
    ref_mx = jax.block_until_ready(lstm_classifier_reference(params, sentence, mx=MXU_DTYPE))
    ref_f32 = jax.block_until_ready(lstm_classifier_reference(params, sentence, mx=jnp.float32))
    if MXU_DTYPE == jnp.float32:
        tol_mx = tol_f32 = 1e-5
    else:
        tol_mx, tol_f32 = 5e-3, 5e-2
    np.testing.assert_allclose(np.asarray(out), np.asarray(ref_mx), atol=tol_mx, rtol=tol_mx)
    np.testing.assert_allclose(np.asarray(out), np.asarray(ref_f32), atol=tol_f32, rtol=tol_f32)

    print("KERNEL_OK")
</pallas_src>

<mosaic_0001>
module attributes {stable_mosaic.version = 11 : i64} {
  func.func @lstm_classifier_kernel(%arg0: memref<64x32xbf16, #tpu.memory_space<vmem>>, %arg1: memref<192x256xbf16, #tpu.memory_space<vmem>>, %arg2: memref<72x256xf32, #tpu.memory_space<vmem>>, %arg3: memref<8x4xf32, #tpu.memory_space<vmem>>, %arg4: memref<64x64xf32, #tpu.memory_space<vmem>>) attributes {dimension_semantics = [], scalar_prefetch = 0 : i64, scratch_operands = 1 : i64, tpu.core_type = #tpu.core_type<tc>} {
    %c0 = arith.constant 0 : index
    %c0_0 = arith.constant 0 : index
    %0 = vector.load %arg1[%c0, %c0_0] : memref<192x256xbf16, #tpu.memory_space<vmem>>, vector<32x256xbf16>
    %c32 = arith.constant 32 : index
    %c0_1 = arith.constant 0 : index
    %1 = vector.load %arg1[%c32, %c0_1] : memref<192x256xbf16, #tpu.memory_space<vmem>>, vector<64x256xbf16>
    %c96 = arith.constant 96 : index
    %c0_2 = arith.constant 0 : index
    %2 = vector.load %arg1[%c96, %c0_2] : memref<192x256xbf16, #tpu.memory_space<vmem>>, vector<64x256xbf16>
    %c160 = arith.constant 160 : index
    %c0_3 = arith.constant 0 : index
    %3 = vector.load %arg1[%c160, %c0_3] : memref<192x256xbf16, #tpu.memory_space<vmem>>, vector<32x128xbf16>
    %c0_4 = arith.constant 0 : index
    %c0_5 = arith.constant 0 : index
    %4 = vector.load %arg2[%c0_4, %c0_5] : memref<72x256xf32, #tpu.memory_space<vmem>>, vector<1x256xf32>
    %c1 = arith.constant 1 : index
    %c0_6 = arith.constant 0 : index
    %5 = vector.load %arg2[%c1, %c0_6] : memref<72x256xf32, #tpu.memory_space<vmem>>, vector<1x256xf32>
    %c2 = arith.constant 2 : index
    %c0_7 = arith.constant 0 : index
    %6 = vector.load %arg2[%c2, %c0_7] : memref<72x256xf32, #tpu.memory_space<vmem>>, vector<1x4xf32>
    %c8 = arith.constant 8 : index
    %c0_8 = arith.constant 0 : index
    %7 = vector.load %arg2[%c8, %c0_8] : memref<72x256xf32, #tpu.memory_space<vmem>>, vector<64x4xf32>
    %c0_9 = arith.constant 0 : index
    %c0_10 = arith.constant 0 : index
    %8 = vector.load %arg0[%c0_9, %c0_10] : memref<64x32xbf16, #tpu.memory_space<vmem>>, vector<64x32xbf16>
    %cst = arith.constant dense<0.000000e+00> : vector<64x256xf32>
    %9 = tpu.matmul %8, %0, %cst {dimension_numbers = #tpu.dot_dimension_numbers<[1], [0], [0], [1], [0, 0, 1, 1], [], []>} : vector<64x32xbf16>, vector<32x256xbf16>, vector<64x256xf32> -> vector<64x256xf32>
    %10 = vector.broadcast %4 : vector<1x256xf32> to vector<64x256xf32>
    %11 = arith.addf %9, %10 : vector<64x256xf32>
    %12 = vector.extract_strided_slice %11 {offsets = [0, 0], sizes = [8, 256], strides = [1, 1]} : vector<64x256xf32> to vector<8x256xf32>
    %cst_11 = arith.constant 0.000000e+00 : f32
    %13 = vector.broadcast %cst_11 : f32 to vector<8x64xf32>
    %14 = arith.negf %12 : vector<8x256xf32>
    %15 = math.exp %14 : vector<8x256xf32>
    %cst_12 = arith.constant 1.000000e+00 : f32
    %16 = vector.broadcast %cst_12 : f32 to vector<8x256xf32>
    %17 = arith.addf %16, %15 : vector<8x256xf32>
    %18 = arith.divf %16, %17 : vector<8x256xf32>
    %19 = math.tanh %12 : vector<8x256xf32>
    %20 = vector.extract_strided_slice %18 {offsets = [0, 0], sizes = [8, 64], strides = [1, 1]} : vector<8x256xf32> to vector<8x64xf32>
    %21 = vector.extract_strided_slice %18 {offsets = [0, 64], sizes = [8, 64], strides = [1, 1]} : vector<8x256xf32> to vector<8x64xf32>
    %22 = vector.extract_strided_slice %19 {offsets = [0, 128], sizes = [8, 64], strides = [1, 1]} : vector<8x256xf32> to vector<8x64xf32>
    %23 = vector.extract_strided_slice %18 {offsets = [0, 192], sizes = [8, 64], strides = [1, 1]} : vector<8x256xf32> to vector<8x64xf32>
    %24 = arith.mulf %21, %13 : vector<8x64xf32>
    %25 = arith.mulf %20, %22 : vector<8x64xf32>
    %26 = arith.addf %24, %25 : vector<8x64xf32>
    %27 = math.tanh %26 : vector<8x64xf32>
    %28 = arith.mulf %23, %27 : vector<8x64xf32>
    %29 = vector.extract_strided_slice %28 {offsets = [0, 0], sizes = [8, 32], strides = [1, 1]} : vector<8x64xf32> to vector<8x32xf32>
    %c0_13 = arith.constant 0 : index
    %c0_14 = arith.constant 0 : index
    %30 = vector.load %arg4[%c0_13, %c0_14] : memref<64x64xf32, #tpu.memory_space<vmem>>, vector<8x32xf32>
    tpu.vector_store %arg4[%c0_13, %c0_14], %29 {strides = array<i32>} : memref<64x64xf32, #tpu.memory_space<vmem>>, vector<8x32xf32>,
    %31 = vector.extract_strided_slice %28 {offsets = [0, 32], sizes = [8, 32], strides = [1, 1]} : vector<8x64xf32> to vector<8x32xf32>
    %c56 = arith.constant 56 : index
    %c32_15 = arith.constant 32 : index
    %32 = vector.load %arg4[%c56, %c32_15] : memref<64x64xf32, #tpu.memory_space<vmem>>, vector<8x32xf32>
    tpu.vector_store %arg4[%c56, %c32_15], %31 {strides = array<i32>} : memref<64x64xf32, #tpu.memory_space<vmem>>, vector<8x32xf32>,
    %33 = vector.extract_strided_slice %11 {offsets = [8, 0], sizes = [8, 256], strides = [1, 1]} : vector<64x256xf32> to vector<8x256xf32>
    %34 = arith.truncf %28 : vector<8x64xf32> to vector<8x64xbf16>
    %cst_16 = arith.constant dense<0.000000e+00> : vector<8x256xf32>
    %35 = tpu.matmul %34, %1, %cst_16 {dimension_numbers = #tpu.dot_dimension_numbers<[1], [0], [0], [1], [0, 0, 1, 1], [], []>} : vector<8x64xbf16>, vector<64x256xbf16>, vector<8x256xf32> -> vector<8x256xf32>
    %36 = arith.addf %33, %35 : vector<8x256xf32>
    %37 = arith.negf %36 : vector<8x256xf32>
    %38 = math.exp %37 : vector<8x256xf32>
    %cst_17 = arith.constant 1.000000e+00 : f32
    %39 = vector.broadcast %cst_17 : f32 to vector<8x256xf32>
    %40 = arith.addf %39, %38 : vector<8x256xf32>
    %41 = arith.divf %39, %40 : vector<8x256xf32>
    %42 = math.tanh %36 : vector<8x256xf32>
    %43 = vector.extract_strided_slice %41 {offsets = [0, 0], sizes = [8, 64], strides = [1, 1]} : vector<8x256xf32> to vector<8x64xf32>
    %44 = vector.extract_strided_slice %41 {offsets = [0, 64], sizes = [8, 64], strides = [1, 1]} : vector<8x256xf32> to vector<8x64xf32>
    %45 = vector.extract_strided_slice %42 {offsets = [0, 128], sizes = [8, 64], strides = [1, 1]} : vector<8x256xf32> to vector<8x64xf32>
    %46 = vector.extract_strided_slice %41 {offsets = [0, 192], sizes = [8, 64], strides = [1, 1]} : vector<8x256xf32> to vector<8x64xf32>
    %47 = arith.mulf %44, %26 : vector<8x64xf32>
    %48 = arith.mulf %43, %45 : vector<8x64xf32>
    %49 = arith.addf %47, %48 : vector<8x64xf32>
    %50 = math.tanh %49 : vector<8x64xf32>
    %51 = arith.mulf %46, %50 : vector<8x64xf32>
    %52 = vector.extract_strided_slice %51 {offsets = [0, 0], sizes = [8, 32], strides = [1, 1]} : vector<8x64xf32> to vector<8x32xf32>
    %c8_18 = arith.constant 8 : index
    %c0_19 = arith.constant 0 : index
    %53 = vector.load %arg4[%c8_18, %c0_19] : memref<64x64xf32, #tpu.memory_space<vmem>>, vector<8x32xf32>
    tpu.vector_store %arg4[%c8_18, %c0_19], %52 {strides = array<i32>} : memref<64x64xf32, #tpu.memory_space<vmem>>, vector<8x32xf32>,
    %54 = vector.extract_strided_slice %51 {offsets = [0, 32], sizes = [8, 32], strides = [1, 1]} : vector<8x64xf32> to vector<8x32xf32>
    %c48 = arith.constant 48 : index
    %c32_20 = arith.constant 32 : index
    %55 = vector.load %arg4[%c48, %c32_20] : memref<64x64xf32, #tpu.memory_space<vmem>>, vector<8x32xf32>
    tpu.vector_store %arg4[%c48, %c32_20], %54 {strides = array<i32>} : memref<64x64xf32, #tpu.memory_space<vmem>>, vector<8x32xf32>,
    %56 = vector.extract_strided_slice %11 {offsets = [16, 0], sizes = [8, 256], strides = [1, 1]} : vector<64x256xf32> to vector<8x256xf32>
    %57 = arith.truncf %51 : vector<8x64xf32> to vector<8x64xbf16>
    %cst_21 = arith.constant dense<0.000000e+00> : vector<8x256xf32>
    %58 = tpu.matmul %57, %1, %cst_21 {dimension_numbers = #tpu.dot_dimension_numbers<[1], [0], [0], [1], [0, 0, 1, 1], [], []>} : vector<8x64xbf16>, vector<64x256xbf16>, vector<8x256xf32> -> vector<8x256xf32>
    %59 = arith.addf %56, %58 : vector<8x256xf32>
    %60 = arith.negf %59 : vector<8x256xf32>
    %61 = math.exp %60 : vector<8x256xf32>
    %cst_22 = arith.constant 1.000000e+00 : f32
    %62 = vector.broadcast %cst_22 : f32 to vector<8x256xf32>
    %63 = arith.addf %62, %61 : vector<8x256xf32>
    %64 = arith.divf %62, %63 : vector<8x256xf32>
    %65 = math.tanh %59 : vector<8x256xf32>
    %66 = vector.extract_strided_slice %64 {offsets = [0, 0], sizes = [8, 64], strides = [1, 1]} : vector<8x256xf32> to vector<8x64xf32>
    %67 = vector.extract_strided_slice %64 {offsets = [0, 64], sizes = [8, 64], strides = [1, 1]} : vector<8x256xf32> to vector<8x64xf32>
    %68 = vector.extract_strided_slice %65 {offsets = [0, 128], sizes = [8, 64], strides = [1, 1]} : vector<8x256xf32> to vector<8x64xf32>
    %69 = vector.extract_strided_slice %64 {offsets = [0, 192], sizes = [8, 64], strides = [1, 1]} : vector<8x256xf32> to vector<8x64xf32>
    %70 = arith.mulf %67, %49 : vector<8x64xf32>
    %71 = arith.mulf %66, %68 : vector<8x64xf32>
    %72 = arith.addf %70, %71 : vector<8x64xf32>
    %73 = math.tanh %72 : vector<8x64xf32>
    %74 = arith.mulf %69, %73 : vector<8x64xf32>
    %75 = vector.extract_strided_slice %74 {offsets = [0, 0], sizes = [8, 32], strides = [1, 1]} : vector<8x64xf32> to vector<8x32xf32>
    %c16 = arith.constant 16 : index
    %c0_23 = arith.constant 0 : index
    %76 = vector.load %arg4[%c16, %c0_23] : memref<64x64xf32, #tpu.memory_space<vmem>>, vector<8x32xf32>
    tpu.vector_store %arg4[%c16, %c0_23], %75 {strides = array<i32>} : memref<64x64xf32, #tpu.memory_space<vmem>>, vector<8x32xf32>,
    %77 = vector.extract_strided_slice %74 {offsets = [0, 32], sizes = [8, 32], strides = [1, 1]} : vector<8x64xf32> to vector<8x32xf32>
    %c40 = arith.constant 40 : index
    %c32_24 = arith.constant 32 : index
    %78 = vector.load %arg4[%c40, %c32_24] : memref<64x64xf32, #tpu.memory_space<vmem>>, vector<8x32xf32>
    tpu.vector_store %arg4[%c40, %c32_24], %77 {strides = array<i32>} : memref<64x64xf32, #tpu.memory_space<vmem>>, vector<8x32xf32>,
    %79 = vector.extract_strided_slice %11 {offsets = [24, 0], sizes = [8, 256], strides = [1, 1]} : vector<64x256xf32> to vector<8x256xf32>
    %80 = arith.truncf %74 : vector<8x64xf32> to vector<8x64xbf16>
    %cst_25 = arith.constant dense<0.000000e+00> : vector<8x256xf32>
    %81 = tpu.matmul %80, %1, %cst_25 {dimension_numbers = #tpu.dot_dimension_numbers<[1], [0], [0], [1], [0, 0, 1, 1], [], []>} : vector<8x64xbf16>, vector<64x256xbf16>, vector<8x256xf32> -> vector<8x256xf32>
    %82 = arith.addf %79, %81 : vector<8x256xf32>
    %83 = arith.negf %82 : vector<8x256xf32>
    %84 = math.exp %83 : vector<8x256xf32>
    %cst_26 = arith.constant 1.000000e+00 : f32
    %85 = vector.broadcast %cst_26 : f32 to vector<8x256xf32>
    %86 = arith.addf %85, %84 : vector<8x256xf32>
    %87 = arith.divf %85, %86 : vector<8x256xf32>
    %88 = math.tanh %82 : vector<8x256xf32>
    %89 = vector.extract_strided_slice %87 {offsets = [0, 0], sizes = [8, 64], strides = [1, 1]} : vector<8x256xf32> to vector<8x64xf32>
    %90 = vector.extract_strided_slice %87 {offsets = [0, 64], sizes = [8, 64], strides = [1, 1]} : vector<8x256xf32> to vector<8x64xf32>
    %91 = vector.extract_strided_slice %88 {offsets = [0, 128], sizes = [8, 64], strides = [1, 1]} : vector<8x256xf32> to vector<8x64xf32>
    %92 = vector.extract_strided_slice %87 {offsets = [0, 192], sizes = [8, 64], strides = [1, 1]} : vector<8x256xf32> to vector<8x64xf32>
    %93 = arith.mulf %90, %72 : vector<8x64xf32>
    %94 = arith.mulf %89, %91 : vector<8x64xf32>
    %95 = arith.addf %93, %94 : vector<8x64xf32>
    %96 = math.tanh %95 : vector<8x64xf32>
    %97 = arith.mulf %92, %96 : vector<8x64xf32>
    %98 = vector.extract_strided_slice %97 {offsets = [0, 0], sizes = [8, 32], strides = [1, 1]} : vector<8x64xf32> to vector<8x32xf32>
    %c24 = arith.constant 24 : index
    %c0_27 = arith.constant 0 : index
    %99 = vector.load %arg4[%c24, %c0_27] : memref<64x64xf32, #tpu.memory_space<vmem>>, vector<8x32xf32>
    tpu.vector_store %arg4[%c24, %c0_27], %98 {strides = array<i32>} : memref<64x64xf32, #tpu.memory_space<vmem>>, vector<8x32xf32>,
    %100 = vector.extract_strided_slice %97 {offsets = [0, 32], sizes = [8, 32], strides = [1, 1]} : vector<8x64xf32> to vector<8x32xf32>
    %c32_28 = arith.constant 32 : index
    %c32_29 = arith.constant 32 : index
    %101 = vector.load %arg4[%c32_28, %c32_29] : memref<64x64xf32, #tpu.memory_space<vmem>>, vector<8x32xf32>
    tpu.vector_store %arg4[%c32_28, %c32_29], %100 {strides = array<i32>} : memref<64x64xf32, #tpu.memory_space<vmem>>, vector<8x32xf32>,
    %102 = vector.extract_strided_slice %11 {offsets = [32, 0], sizes = [8, 256], strides = [1, 1]} : vector<64x256xf32> to vector<8x256xf32>
    %103 = arith.truncf %97 : vector<8x64xf32> to vector<8x64xbf16>
    %cst_30 = arith.constant dense<0.000000e+00> : vector<8x256xf32>
    %104 = tpu.matmul %103, %1, %cst_30 {dimension_numbers = #tpu.dot_dimension_numbers<[1], [0], [0], [1], [0, 0, 1, 1], [], []>} : vector<8x64xbf16>, vector<64x256xbf16>, vector<8x256xf32> -> vector<8x256xf32>
    %105 = arith.addf %102, %104 : vector<8x256xf32>
    %106 = arith.negf %105 : vector<8x256xf32>
    %107 = math.exp %106 : vector<8x256xf32>
    %cst_31 = arith.constant 1.000000e+00 : f32
    %108 = vector.broadcast %cst_31 : f32 to vector<8x256xf32>
    %109 = arith.addf %108, %107 : vector<8x256xf32>
    %110 = arith.divf %108, %109 : vector<8x256xf32>
    %111 = math.tanh %105 : vector<8x256xf32>
    %112 = vector.extract_strided_slice %110 {offsets = [0, 0], sizes = [8, 64], strides = [1, 1]} : vector<8x256xf32> to vector<8x64xf32>
    %113 = vector.extract_strided_slice %110 {offsets = [0, 64], sizes = [8, 64], strides = [1, 1]} : vector<8x256xf32> to vector<8x64xf32>
    %114 = vector.extract_strided_slice %111 {offsets = [0, 128], sizes = [8, 64], strides = [1, 1]} : vector<8x256xf32> to vector<8x64xf32>
    %115 = vector.extract_strided_slice %110 {offsets = [0, 192], sizes = [8, 64], strides = [1, 1]} : vector<8x256xf32> to vector<8x64xf32>
    %116 = arith.mulf %113, %95 : vector<8x64xf32>
    %117 = arith.mulf %112, %114 : vector<8x64xf32>
    %118 = arith.addf %116, %117 : vector<8x64xf32>
    %119 = math.tanh %118 : vector<8x64xf32>
    %120 = arith.mulf %115, %119 : vector<8x64xf32>
    %121 = vector.extract_strided_slice %120 {offsets = [0, 0], sizes = [8, 32], strides = [1, 1]} : vector<8x64xf32> to vector<8x32xf32>
    %c32_32 = arith.constant 32 : index
    %c0_33 = arith.constant 0 : index
    %122 = vector.load %arg4[%c32_32, %c0_33] : memref<64x64xf32, #tpu.memory_space<vmem>>, vector<8x32xf32>
    tpu.vector_store %arg4[%c32_32, %c0_33], %121 {strides = array<i32>} : memref<64x64xf32, #tpu.memory_space<vmem>>, vector<8x32xf32>,
    %123 = vector.extract_strided_slice %120 {offsets = [0, 32], sizes = [8, 32], strides = [1, 1]} : vector<8x64xf32> to vector<8x32xf32>
    %c24_34 = arith.constant 24 : index
    %c32_35 = arith.constant 32 : index
    %124 = vector.load %arg4[%c24_34, %c32_35] : memref<64x64xf32, #tpu.memory_space<vmem>>, vector<8x32xf32>
    tpu.vector_store %arg4[%c24_34, %c32_35], %123 {strides = array<i32>} : memref<64x64xf32, #tpu.memory_space<vmem>>, vector<8x32xf32>,
    %125 = vector.extract_strided_slice %11 {offsets = [40, 0], sizes = [8, 256], strides = [1, 1]} : vector<64x256xf32> to vector<8x256xf32>
    %126 = arith.truncf %120 : vector<8x64xf32> to vector<8x64xbf16>
    %cst_36 = arith.constant dense<0.000000e+00> : vector<8x256xf32>
    %127 = tpu.matmul %126, %1, %cst_36 {dimension_numbers = #tpu.dot_dimension_numbers<[1], [0], [0], [1], [0, 0, 1, 1], [], []>} : vector<8x64xbf16>, vector<64x256xbf16>, vector<8x256xf32> -> vector<8x256xf32>
    %128 = arith.addf %125, %127 : vector<8x256xf32>
    %129 = arith.negf %128 : vector<8x256xf32>
    %130 = math.exp %129 : vector<8x256xf32>
    %cst_37 = arith.constant 1.000000e+00 : f32
    %131 = vector.broadcast %cst_37 : f32 to vector<8x256xf32>
    %132 = arith.addf %131, %130 : vector<8x256xf32>
    %133 = arith.divf %131, %132 : vector<8x256xf32>
    %134 = math.tanh %128 : vector<8x256xf32>
    %135 = vector.extract_strided_slice %133 {offsets = [0, 0], sizes = [8, 64], strides = [1, 1]} : vector<8x256xf32> to vector<8x64xf32>
    %136 = vector.extract_strided_slice %133 {offsets = [0, 64], sizes = [8, 64], strides = [1, 1]} : vector<8x256xf32> to vector<8x64xf32>
    %137 = vector.extract_strided_slice %134 {offsets = [0, 128], sizes = [8, 64], strides = [1, 1]} : vector<8x256xf32> to vector<8x64xf32>
    %138 = vector.extract_strided_slice %133 {offsets = [0, 192], sizes = [8, 64], strides = [1, 1]} : vector<8x256xf32> to vector<8x64xf32>
    %139 = arith.mulf %136, %118 : vector<8x64xf32>
    %140 = arith.mulf %135, %137 : vector<8x64xf32>
    %141 = arith.addf %139, %140 : vector<8x64xf32>
    %142 = math.tanh %141 : vector<8x64xf32>
    %143 = arith.mulf %138, %142 : vector<8x64xf32>
    %144 = vector.extract_strided_slice %143 {offsets = [0, 0], sizes = [8, 32], strides = [1, 1]} : vector<8x64xf32> to vector<8x32xf32>
    %c40_38 = arith.constant 40 : index
    %c0_39 = arith.constant 0 : index
    %145 = vector.load %arg4[%c40_38, %c0_39] : memref<64x64xf32, #tpu.memory_space<vmem>>, vector<8x32xf32>
    tpu.vector_store %arg4[%c40_38, %c0_39], %144 {strides = array<i32>} : memref<64x64xf32, #tpu.memory_space<vmem>>, vector<8x32xf32>,
    %146 = vector.extract_strided_slice %143 {offsets = [0, 32], sizes = [8, 32], strides = [1, 1]} : vector<8x64xf32> to vector<8x32xf32>
    %c16_40 = arith.constant 16 : index
    %c32_41 = arith.constant 32 : index
    %147 = vector.load %arg4[%c16_40, %c32_41] : memref<64x64xf32, #tpu.memory_space<vmem>>, vector<8x32xf32>
    tpu.vector_store %arg4[%c16_40, %c32_41], %146 {strides = array<i32>} : memref<64x64xf32, #tpu.memory_space<vmem>>, vector<8x32xf32>,
    %148 = vector.extract_strided_slice %11 {offsets = [48, 0], sizes = [8, 256], strides = [1, 1]} : vector<64x256xf32> to vector<8x256xf32>
    %149 = arith.truncf %143 : vector<8x64xf32> to vector<8x64xbf16>
    %cst_42 = arith.constant dense<0.000000e+00> : vector<8x256xf32>
    %150 = tpu.matmul %149, %1, %cst_42 {dimension_numbers = #tpu.dot_dimension_numbers<[1], [0], [0], [1], [0, 0, 1, 1], [], []>} : vector<8x64xbf16>, vector<64x256xbf16>, vector<8x256xf32> -> vector<8x256xf32>
    %151 = arith.addf %148, %150 : vector<8x256xf32>
    %152 = arith.negf %151 : vector<8x256xf32>
    %153 = math.exp %152 : vector<8x256xf32>
    %cst_43 = arith.constant 1.000000e+00 : f32
    %154 = vector.broadcast %cst_43 : f32 to vector<8x256xf32>
    %155 = arith.addf %154, %153 : vector<8x256xf32>
    %156 = arith.divf %154, %155 : vector<8x256xf32>
    %157 = math.tanh %151 : vector<8x256xf32>
    %158 = vector.extract_strided_slice %156 {offsets = [0, 0], sizes = [8, 64], strides = [1, 1]} : vector<8x256xf32> to vector<8x64xf32>
    %159 = vector.extract_strided_slice %156 {offsets = [0, 64], sizes = [8, 64], strides = [1, 1]} : vector<8x256xf32> to vector<8x64xf32>
    %160 = vector.extract_strided_slice %157 {offsets = [0, 128], sizes = [8, 64], strides = [1, 1]} : vector<8x256xf32> to vector<8x64xf32>
    %161 = vector.extract_strided_slice %156 {offsets = [0, 192], sizes = [8, 64], strides = [1, 1]} : vector<8x256xf32> to vector<8x64xf32>
    %162 = arith.mulf %159, %141 : vector<8x64xf32>
    %163 = arith.mulf %158, %160 : vector<8x64xf32>
    %164 = arith.addf %162, %163 : vector<8x64xf32>
    %165 = math.tanh %164 : vector<8x64xf32>
    %166 = arith.mulf %161, %165 : vector<8x64xf32>
    %167 = vector.extract_strided_slice %166 {offsets = [0, 0], sizes = [8, 32], strides = [1, 1]} : vector<8x64xf32> to vector<8x32xf32>
    %c48_44 = arith.constant 48 : index
    %c0_45 = arith.constant 0 : index
    %168 = vector.load %arg4[%c48_44, %c0_45] : memref<64x64xf32, #tpu.memory_space<vmem>>, vector<8x32xf32>
    tpu.vector_store %arg4[%c48_44, %c0_45], %167 {strides = array<i32>} : memref<64x64xf32, #tpu.memory_space<vmem>>, vector<8x32xf32>,
    %169 = vector.extract_strided_slice %166 {offsets = [0, 32], sizes = [8, 32], strides = [1, 1]} : vector<8x64xf32> to vector<8x32xf32>
    %c8_46 = arith.constant 8 : index
    %c32_47 = arith.constant 32 : index
    %170 = vector.load %arg4[%c8_46, %c32_47] : memref<64x64xf32, #tpu.memory_space<vmem>>, vector<8x32xf32>
    tpu.vector_store %arg4[%c8_46, %c32_47], %169 {strides = array<i32>} : memref<64x64xf32, #tpu.memory_space<vmem>>, vector<8x32xf32>,
    %171 = vector.extract_strided_slice %11 {offsets = [56, 0], sizes = [8, 256], strides = [1, 1]} : vector<64x256xf32> to vector<8x256xf32>
    %172 = arith.truncf %166 : vector<8x64xf32> to vector<8x64xbf16>
    %cst_48 = arith.constant dense<0.000000e+00> : vector<8x256xf32>
    %173 = tpu.matmul %172, %1, %cst_48 {dimension_numbers = #tpu.dot_dimension_numbers<[1], [0], [0], [1], [0, 0, 1, 1], [], []>} : vector<8x64xbf16>, vector<64x256xbf16>, vector<8x256xf32> -> vector<8x256xf32>
    %174 = arith.addf %171, %173 : vector<8x256xf32>
    %175 = arith.negf %174 : vector<8x256xf32>
    %176 = math.exp %175 : vector<8x256xf32>
    %cst_49 = arith.constant 1.000000e+00 : f32
    %177 = vector.broadcast %cst_49 : f32 to vector<8x256xf32>
    %178 = arith.addf %177, %176 : vector<8x256xf32>
    %179 = arith.divf %177, %178 : vector<8x256xf32>
    %180 = math.tanh %174 : vector<8x256xf32>
    %181 = vector.extract_strided_slice %179 {offsets = [0, 0], sizes = [8, 64], strides = [1, 1]} : vector<8x256xf32> to vector<8x64xf32>
    %182 = vector.extract_strided_slice %179 {offsets = [0, 64], sizes = [8, 64], strides = [1, 1]} : vector<8x256xf32> to vector<8x64xf32>
    %183 = vector.extract_strided_slice %180 {offsets = [0, 128], sizes = [8, 64], strides = [1, 1]} : vector<8x256xf32> to vector<8x64xf32>
    %184 = vector.extract_strided_slice %179 {offsets = [0, 192], sizes = [8, 64], strides = [1, 1]} : vector<8x256xf32> to vector<8x64xf32>
    %185 = arith.mulf %182, %164 : vector<8x64xf32>
    %186 = arith.mulf %181, %183 : vector<8x64xf32>
    %187 = arith.addf %185, %186 : vector<8x64xf32>
    %188 = math.tanh %187 : vector<8x64xf32>
    %189 = arith.mulf %184, %188 : vector<8x64xf32>
    %190 = vector.extract_strided_slice %189 {offsets = [0, 0], sizes = [8, 32], strides = [1, 1]} : vector<8x64xf32> to vector<8x32xf32>
    %c56_50 = arith.constant 56 : index
    %c0_51 = arith.constant 0 : index
    %191 = vector.load %arg4[%c56_50, %c0_51] : memref<64x64xf32, #tpu.memory_space<vmem>>, vector<8x32xf32>
    tpu.vector_store %arg4[%c56_50, %c0_51], %190 {strides = array<i32>} : memref<64x64xf32, #tpu.memory_space<vmem>>, vector<8x32xf32>,
    %192 = vector.extract_strided_slice %189 {offsets = [0, 32], sizes = [8, 32], strides = [1, 1]} : vector<8x64xf32> to vector<8x32xf32>
    %c0_52 = arith.constant 0 : index
    %c32_53 = arith.constant 32 : index
    %193 = vector.load %arg4[%c0_52, %c32_53] : memref<64x64xf32, #tpu.memory_space<vmem>>, vector<8x32xf32>
    tpu.vector_store %arg4[%c0_52, %c32_53], %192 {strides = array<i32>} : memref<64x64xf32, #tpu.memory_space<vmem>>, vector<8x32xf32>,
    %c0_54 = arith.constant 0 : index
    %c0_55 = arith.constant 0 : index
    %194 = vector.load %arg4[%c0_54, %c0_55] : memref<64x64xf32, #tpu.memory_space<vmem>>, vector<64x64xf32>
    %195 = arith.truncf %194 : vector<64x64xf32> to vector<64x64xbf16>
    %cst_56 = arith.constant dense<0.000000e+00> : vector<64x256xf32>
    %196 = tpu.matmul %195, %2, %cst_56 {dimension_numbers = #tpu.dot_dimension_numbers<[1], [0], [0], [1], [0, 0, 1, 1], [], []>} : vector<64x64xbf16>, vector<64x256xbf16>, vector<64x256xf32> -> vector<64x256xf32>
    %197 = vector.broadcast %5 : vector<1x256xf32> to vector<64x256xf32>
    %198 = arith.addf %196, %197 : vector<64x256xf32>
    %199 = vector.extract_strided_slice %198 {offsets = [0, 0], sizes = [8, 128], strides = [1, 1]} : vector<64x256xf32> to vector<8x128xf32>
    %cst_57 = arith.constant 0.000000e+00 : f32
    %200 = vector.broadcast %cst_57 : f32 to vector<8x32xf32>
    %201 = arith.negf %199 : vector<8x128xf32>
    %202 = math.exp %201 : vector<8x128xf32>
    %cst_58 = arith.constant 1.000000e+00 : f32
    %203 = vector.broadcast %cst_58 : f32 to vector<8x128xf32>
    %204 = arith.addf %203, %202 : vector<8x128xf32>
    %205 = arith.divf %203, %204 : vector<8x128xf32>
    %206 = math.tanh %199 : vector<8x128xf32>
    %207 = vector.extract_strided_slice %205 {offsets = [0, 32], sizes = [8, 32], strides = [1, 1]} : vector<8x128xf32> to vector<8x32xf32>
    %208 = arith.mulf %207, %200 : vector<8x32xf32>
    %209 = vector.extract_strided_slice %205 {offsets = [0, 0], sizes = [8, 32], strides = [1, 1]} : vector<8x128xf32> to vector<8x32xf32>
    %210 = vector.extract_strided_slice %206 {offsets = [0, 64], sizes = [8, 32], strides = [1, 1]} : vector<8x128xf32> to vector<8x32xf32>
    %211 = arith.mulf %209, %210 : vector<8x32xf32>
    %212 = arith.addf %208, %211 : vector<8x32xf32>
    %213 = vector.extract_strided_slice %205 {offsets = [0, 96], sizes = [8, 32], strides = [1, 1]} : vector<8x128xf32> to vector<8x32xf32>
    %214 = math.tanh %212 : vector<8x32xf32>
    %215 = arith.mulf %213, %214 : vector<8x32xf32>
    %216 = vector.extract_strided_slice %198 {offsets = [8, 0], sizes = [8, 128], strides = [1, 1]} : vector<64x256xf32> to vector<8x128xf32>
    %217 = arith.truncf %215 : vector<8x32xf32> to vector<8x32xbf16>
    %cst_59 = arith.constant dense<0.000000e+00> : vector<8x128xf32>
    %218 = tpu.matmul %217, %3, %cst_59 {dimension_numbers = #tpu.dot_dimension_numbers<[1], [0], [0], [1], [0, 0, 1, 1], [], []>} : vector<8x32xbf16>, vector<32x128xbf16>, vector<8x128xf32> -> vector<8x128xf32>
    %219 = arith.addf %216, %218 : vector<8x128xf32>
    %220 = arith.negf %219 : vector<8x128xf32>
    %221 = math.exp %220 : vector<8x128xf32>
    %cst_60 = arith.constant 1.000000e+00 : f32
    %222 = vector.broadcast %cst_60 : f32 to vector<8x128xf32>
    %223 = arith.addf %222, %221 : vector<8x128xf32>
    %224 = arith.divf %222, %223 : vector<8x128xf32>
    %225 = math.tanh %219 : vector<8x128xf32>
    %226 = vector.extract_strided_slice %224 {offsets = [0, 32], sizes = [8, 32], strides = [1, 1]} : vector<8x128xf32> to vector<8x32xf32>
    %227 = arith.mulf %226, %212 : vector<8x32xf32>
    %228 = vector.extract_strided_slice %224 {offsets = [0, 0], sizes = [8, 32], strides = [1, 1]} : vector<8x128xf32> to vector<8x32xf32>
    %229 = vector.extract_strided_slice %225 {offsets = [0, 64], sizes = [8, 32], strides = [1, 1]} : vector<8x128xf32> to vector<8x32xf32>
    %230 = arith.mulf %228, %229 : vector<8x32xf32>
    %231 = arith.addf %227, %230 : vector<8x32xf32>
    %232 = vector.extract_strided_slice %224 {offsets = [0, 96], sizes = [8, 32], strides = [1, 1]} : vector<8x128xf32> to vector<8x32xf32>
    %233 = math.tanh %231 : vector<8x32xf32>
    %234 = arith.mulf %232, %233 : vector<8x32xf32>
    %235 = vector.extract_strided_slice %198 {offsets = [16, 0], sizes = [8, 128], strides = [1, 1]} : vector<64x256xf32> to vector<8x128xf32>
    %236 = arith.truncf %234 : vector<8x32xf32> to vector<8x32xbf16>
    %cst_61 = arith.constant dense<0.000000e+00> : vector<8x128xf32>
    %237 = tpu.matmul %236, %3, %cst_61 {dimension_numbers = #tpu.dot_dimension_numbers<[1], [0], [0], [1], [0, 0, 1, 1], [], []>} : vector<8x32xbf16>, vector<32x128xbf16>, vector<8x128xf32> -> vector<8x128xf32>
    %238 = arith.addf %235, %237 : vector<8x128xf32>
    %239 = arith.negf %238 : vector<8x128xf32>
    %240 = math.exp %239 : vector<8x128xf32>
    %cst_62 = arith.constant 1.000000e+00 : f32
    %241 = vector.broadcast %cst_62 : f32 to vector<8x128xf32>
    %242 = arith.addf %241, %240 : vector<8x128xf32>
    %243 = arith.divf %241, %242 : vector<8x128xf32>
    %244 = math.tanh %238 : vector<8x128xf32>
    %245 = vector.extract_strided_slice %243 {offsets = [0, 32], sizes = [8, 32], strides = [1, 1]} : vector<8x128xf32> to vector<8x32xf32>
    %246 = arith.mulf %245, %231 : vector<8x32xf32>
    %247 = vector.extract_strided_slice %243 {offsets = [0, 0], sizes = [8, 32], strides = [1, 1]} : vector<8x128xf32> to vector<8x32xf32>
    %248 = vector.extract_strided_slice %244 {offsets = [0, 64], sizes = [8, 32], strides = [1, 1]} : vector<8x128xf32> to vector<8x32xf32>
    %249 = arith.mulf %247, %248 : vector<8x32xf32>
    %250 = arith.addf %246, %249 : vector<8x32xf32>
    %251 = vector.extract_strided_slice %243 {offsets = [0, 96], sizes = [8, 32], strides = [1, 1]} : vector<8x128xf32> to vector<8x32xf32>
    %252 = math.tanh %250 : vector<8x32xf32>
    %253 = arith.mulf %251, %252 : vector<8x32xf32>
    %254 = vector.extract_strided_slice %198 {offsets = [24, 0], sizes = [8, 128], strides = [1, 1]} : vector<64x256xf32> to vector<8x128xf32>
    %255 = arith.truncf %253 : vector<8x32xf32> to vector<8x32xbf16>
    %cst_63 = arith.constant dense<0.000000e+00> : vector<8x128xf32>
    %256 = tpu.matmul %255, %3, %cst_63 {dimension_numbers = #tpu.dot_dimension_numbers<[1], [0], [0], [1], [0, 0, 1, 1], [], []>} : vector<8x32xbf16>, vector<32x128xbf16>, vector<8x128xf32> -> vector<8x128xf32>
    %257 = arith.addf %254, %256 : vector<8x128xf32>
    %258 = arith.negf %257 : vector<8x128xf32>
    %259 = math.exp %258 : vector<8x128xf32>
    %cst_64 = arith.constant 1.000000e+00 : f32
    %260 = vector.broadcast %cst_64 : f32 to vector<8x128xf32>
    %261 = arith.addf %260, %259 : vector<8x128xf32>
    %262 = arith.divf %260, %261 : vector<8x128xf32>
    %263 = math.tanh %257 : vector<8x128xf32>
    %264 = vector.extract_strided_slice %262 {offsets = [0, 32], sizes = [8, 32], strides = [1, 1]} : vector<8x128xf32> to vector<8x32xf32>
    %265 = arith.mulf %264, %250 : vector<8x32xf32>
    %266 = vector.extract_strided_slice %262 {offsets = [0, 0], sizes = [8, 32], strides = [1, 1]} : vector<8x128xf32> to vector<8x32xf32>
    %267 = vector.extract_strided_slice %263 {offsets = [0, 64], sizes = [8, 32], strides = [1, 1]} : vector<8x128xf32> to vector<8x32xf32>
    %268 = arith.mulf %266, %267 : vector<8x32xf32>
    %269 = arith.addf %265, %268 : vector<8x32xf32>
    %270 = vector.extract_strided_slice %262 {offsets = [0, 96], sizes = [8, 32], strides = [1, 1]} : vector<8x128xf32> to vector<8x32xf32>
    %271 = math.tanh %269 : vector<8x32xf32>
    %272 = arith.mulf %270, %271 : vector<8x32xf32>
    %273 = vector.extract_strided_slice %198 {offsets = [32, 0], sizes = [8, 128], strides = [1, 1]} : vector<64x256xf32> to vector<8x128xf32>
    %274 = arith.truncf %272 : vector<8x32xf32> to vector<8x32xbf16>
    %cst_65 = arith.constant dense<0.000000e+00> : vector<8x128xf32>
    %275 = tpu.matmul %274, %3, %cst_65 {dimension_numbers = #tpu.dot_dimension_numbers<[1], [0], [0], [1], [0, 0, 1, 1], [], []>} : vector<8x32xbf16>, vector<32x128xbf16>, vector<8x128xf32> -> vector<8x128xf32>
    %276 = arith.addf %273, %275 : vector<8x128xf32>
    %277 = arith.negf %276 : vector<8x128xf32>
    %278 = math.exp %277 : vector<8x128xf32>
    %cst_66 = arith.constant 1.000000e+00 : f32
    %279 = vector.broadcast %cst_66 : f32 to vector<8x128xf32>
    %280 = arith.addf %279, %278 : vector<8x128xf32>
    %281 = arith.divf %279, %280 : vector<8x128xf32>
    %282 = math.tanh %276 : vector<8x128xf32>
    %283 = vector.extract_strided_slice %281 {offsets = [0, 32], sizes = [8, 32], strides = [1, 1]} : vector<8x128xf32> to vector<8x32xf32>
    %284 = arith.mulf %283, %269 : vector<8x32xf32>
    %285 = vector.extract_strided_slice %281 {offsets = [0, 0], sizes = [8, 32], strides = [1, 1]} : vector<8x128xf32> to vector<8x32xf32>
    %286 = vector.extract_strided_slice %282 {offsets = [0, 64], sizes = [8, 32], strides = [1, 1]} : vector<8x128xf32> to vector<8x32xf32>
    %287 = arith.mulf %285, %286 : vector<8x32xf32>
    %288 = arith.addf %284, %287 : vector<8x32xf32>
    %289 = vector.extract_strided_slice %281 {offsets = [0, 96], sizes = [8, 32], strides = [1, 1]} : vector<8x128xf32> to vector<8x32xf32>
    %290 = math.tanh %288 : vector<8x32xf32>
    %291 = arith.mulf %289, %290 : vector<8x32xf32>
    %292 = vector.extract_strided_slice %198 {offsets = [40, 0], sizes = [8, 128], strides = [1, 1]} : vector<64x256xf32> to vector<8x128xf32>
    %293 = arith.truncf %291 : vector<8x32xf32> to vector<8x32xbf16>
    %cst_67 = arith.constant dense<0.000000e+00> : vector<8x128xf32>
    %294 = tpu.matmul %293, %3, %cst_67 {dimension_numbers = #tpu.dot_dimension_numbers<[1], [0], [0], [1], [0, 0, 1, 1], [], []>} : vector<8x32xbf16>, vector<32x128xbf16>, vector<8x128xf32> -> vector<8x128xf32>
    %295 = arith.addf %292, %294 : vector<8x128xf32>
    %296 = arith.negf %295 : vector<8x128xf32>
    %297 = math.exp %296 : vector<8x128xf32>
    %cst_68 = arith.constant 1.000000e+00 : f32
    %298 = vector.broadcast %cst_68 : f32 to vector<8x128xf32>
    %299 = arith.addf %298, %297 : vector<8x128xf32>
    %300 = arith.divf %298, %299 : vector<8x128xf32>
    %301 = math.tanh %295 : vector<8x128xf32>
    %302 = vector.extract_strided_slice %300 {offsets = [0, 32], sizes = [8, 32], strides = [1, 1]} : vector<8x128xf32> to vector<8x32xf32>
    %303 = arith.mulf %302, %288 : vector<8x32xf32>
    %304 = vector.extract_strided_slice %300 {offsets = [0, 0], sizes = [8, 32], strides = [1, 1]} : vector<8x128xf32> to vector<8x32xf32>
    %305 = vector.extract_strided_slice %301 {offsets = [0, 64], sizes = [8, 32], strides = [1, 1]} : vector<8x128xf32> to vector<8x32xf32>
    %306 = arith.mulf %304, %305 : vector<8x32xf32>
    %307 = arith.addf %303, %306 : vector<8x32xf32>
    %308 = vector.extract_strided_slice %300 {offsets = [0, 96], sizes = [8, 32], strides = [1, 1]} : vector<8x128xf32> to vector<8x32xf32>
    %309 = math.tanh %307 : vector<8x32xf32>
    %310 = arith.mulf %308, %309 : vector<8x32xf32>
    %311 = vector.extract_strided_slice %198 {offsets = [48, 0], sizes = [8, 128], strides = [1, 1]} : vector<64x256xf32> to vector<8x128xf32>
    %312 = arith.truncf %310 : vector<8x32xf32> to vector<8x32xbf16>
    %cst_69 = arith.constant dense<0.000000e+00> : vector<8x128xf32>
    %313 = tpu.matmul %312, %3, %cst_69 {dimension_numbers = #tpu.dot_dimension_numbers<[1], [0], [0], [1], [0, 0, 1, 1], [], []>} : vector<8x32xbf16>, vector<32x128xbf16>, vector<8x128xf32> -> vector<8x128xf32>
    %314 = arith.addf %311, %313 : vector<8x128xf32>
    %315 = arith.negf %314 : vector<8x128xf32>
    %316 = math.exp %315 : vector<8x128xf32>
    %cst_70 = arith.constant 1.000000e+00 : f32
    %317 = vector.broadcast %cst_70 : f32 to vector<8x128xf32>
    %318 = arith.addf %317, %316 : vector<8x128xf32>
    %319 = arith.divf %317, %318 : vector<8x128xf32>
    %320 = math.tanh %314 : vector<8x128xf32>
    %321 = vector.extract_strided_slice %319 {offsets = [0, 32], sizes = [8, 32], strides = [1, 1]} : vector<8x128xf32> to vector<8x32xf32>
    %322 = arith.mulf %321, %307 : vector<8x32xf32>
    %323 = vector.extract_strided_slice %319 {offsets = [0, 0], sizes = [8, 32], strides = [1, 1]} : vector<8x128xf32> to vector<8x32xf32>
    %324 = vector.extract_strided_slice %320 {offsets = [0, 64], sizes = [8, 32], strides = [1, 1]} : vector<8x128xf32> to vector<8x32xf32>
    %325 = arith.mulf %323, %324 : vector<8x32xf32>
    %326 = arith.addf %322, %325 : vector<8x32xf32>
    %327 = vector.extract_strided_slice %319 {offsets = [0, 96], sizes = [8, 32], strides = [1, 1]} : vector<8x128xf32> to vector<8x32xf32>
    %328 = math.tanh %326 : vector<8x32xf32>
    %329 = arith.mulf %327, %328 : vector<8x32xf32>
    %330 = vector.extract_strided_slice %198 {offsets = [56, 0], sizes = [8, 128], strides = [1, 1]} : vector<64x256xf32> to vector<8x128xf32>
    %331 = arith.truncf %329 : vector<8x32xf32> to vector<8x32xbf16>
    %cst_71 = arith.constant dense<0.000000e+00> : vector<8x128xf32>
    %332 = tpu.matmul %331, %3, %cst_71 {dimension_numbers = #tpu.dot_dimension_numbers<[1], [0], [0], [1], [0, 0, 1, 1], [], []>} : vector<8x32xbf16>, vector<32x128xbf16>, vector<8x128xf32> -> vector<8x128xf32>
    %333 = arith.addf %330, %332 : vector<8x128xf32>
    %334 = arith.negf %333 : vector<8x128xf32>
    %335 = math.exp %334 : vector<8x128xf32>
    %cst_72 = arith.constant 1.000000e+00 : f32
    %336 = vector.broadcast %cst_72 : f32 to vector<8x128xf32>
    %337 = arith.addf %336, %335 : vector<8x128xf32>
    %338 = arith.divf %336, %337 : vector<8x128xf32>
    %339 = math.tanh %333 : vector<8x128xf32>
    %340 = vector.extract_strided_slice %338 {offsets = [0, 32], sizes = [8, 32], strides = [1, 1]} : vector<8x128xf32> to vector<8x32xf32>
    %341 = arith.mulf %340, %326 : vector<8x32xf32>
    %342 = vector.extract_strided_slice %338 {offsets = [0, 0], sizes = [8, 32], strides = [1, 1]} : vector<8x128xf32> to vector<8x32xf32>
    %343 = vector.extract_strided_slice %339 {offsets = [0, 64], sizes = [8, 32], strides = [1, 1]} : vector<8x128xf32> to vector<8x32xf32>
    %344 = arith.mulf %342, %343 : vector<8x32xf32>
    %345 = arith.addf %341, %344 : vector<8x32xf32>
    %346 = vector.extract_strided_slice %338 {offsets = [0, 96], sizes = [8, 32], strides = [1, 1]} : vector<8x128xf32> to vector<8x32xf32>
    %347 = math.tanh %345 : vector<8x32xf32>
    %348 = arith.mulf %346, %347 : vector<8x32xf32>
    %349 = vector.extract_strided_slice %198 {offsets = [56, 128], sizes = [8, 128], strides = [1, 1]} : vector<64x256xf32> to vector<8x128xf32>
    %cst_73 = arith.constant 0.000000e+00 : f32
    %350 = vector.broadcast %cst_73 : f32 to vector<8x32xf32>
    %351 = arith.negf %349 : vector<8x128xf32>
    %352 = math.exp %351 : vector<8x128xf32>
    %cst_74 = arith.constant 1.000000e+00 : f32
    %353 = vector.broadcast %cst_74 : f32 to vector<8x128xf32>
    %354 = arith.addf %353, %352 : vector<8x128xf32>
    %355 = arith.divf %353, %354 : vector<8x128xf32>
    %356 = math.tanh %349 : vector<8x128xf32>
    %357 = vector.extract_strided_slice %355 {offsets = [0, 32], sizes = [8, 32], strides = [1, 1]} : vector<8x128xf32> to vector<8x32xf32>
    %358 = arith.mulf %357, %350 : vector<8x32xf32>
    %359 = vector.extract_strided_slice %355 {offsets = [0, 0], sizes = [8, 32], strides = [1, 1]} : vector<8x128xf32> to vector<8x32xf32>
    %360 = vector.extract_strided_slice %356 {offsets = [0, 64], sizes = [8, 32], strides = [1, 1]} : vector<8x128xf32> to vector<8x32xf32>
    %361 = arith.mulf %359, %360 : vector<8x32xf32>
    %362 = arith.addf %358, %361 : vector<8x32xf32>
    %363 = vector.extract_strided_slice %355 {offsets = [0, 96], sizes = [8, 32], strides = [1, 1]} : vector<8x128xf32> to vector<8x32xf32>
    %364 = math.tanh %362 : vector<8x32xf32>
    %365 = arith.mulf %363, %364 : vector<8x32xf32>
    %366 = vector.extract_strided_slice %7 {offsets = [0, 0], sizes = [32, 4], strides = [1, 1]} : vector<64x4xf32> to vector<32x4xf32>
    %cst_75 = arith.constant dense<0.000000e+00> : vector<8x4xf32>
    %367 = tpu.matmul %348, %366, %cst_75 {dimension_numbers = #tpu.dot_dimension_numbers<[1], [0], [0], [1], [0, 0, 1, 1], [], []>} : vector<8x32xf32>, vector<32x4xf32>, vector<8x4xf32> -> vector<8x4xf32>
    %368 = vector.extract_strided_slice %7 {offsets = [32, 0], sizes = [32, 4], strides = [1, 1]} : vector<64x4xf32> to vector<32x4xf32>
    %cst_76 = arith.constant dense<0.000000e+00> : vector<8x4xf32>
    %369 = tpu.matmul %365, %368, %cst_76 {dimension_numbers = #tpu.dot_dimension_numbers<[1], [0], [0], [1], [0, 0, 1, 1], [], []>} : vector<8x32xf32>, vector<32x4xf32>, vector<8x4xf32> -> vector<8x4xf32>
    %370 = arith.addf %367, %369 : vector<8x4xf32>
    %371 = vector.broadcast %6 : vector<1x4xf32> to vector<8x4xf32>
    %372 = arith.addf %370, %371 : vector<8x4xf32>
    %cst_77 = arith.constant dense<0xFF800000> : vector<8xf32>
    %373 = vector.multi_reduction <maximumf>, %372, %cst_77 [1] : vector<8x4xf32> to vector<8xf32>
    %374 = vector.shape_cast %373 : vector<8xf32> to vector<8x1xf32>
    %375 = vector.broadcast %374 : vector<8x1xf32> to vector<8x4xf32>
    %376 = arith.subf %372, %375 : vector<8x4xf32>
    %377 = math.exp %376 : vector<8x4xf32>
    %cst_78 = arith.constant dense<0.000000e+00> : vector<8xf32>
    %378 = vector.multi_reduction <add>, %377, %cst_78 [1] : vector<8x4xf32> to vector<8xf32>
    %379 = vector.shape_cast %378 : vector<8xf32> to vector<8x1xf32>
    %380 = math.log %379 : vector<8x1xf32>
    %381 = vector.broadcast %380 : vector<8x1xf32> to vector<8x4xf32>
    %382 = arith.subf %376, %381 : vector<8x4xf32>
    %c0_79 = arith.constant 0 : index
    %c0_80 = arith.constant 0 : index
    %383 = vector.load %arg3[%c0_79, %c0_80] : memref<8x4xf32, #tpu.memory_space<vmem>>, vector<8x4xf32>
    tpu.vector_store %arg3[%c0_79, %c0_80], %382 {strides = array<i32>} : memref<8x4xf32, #tpu.memory_space<vmem>>, vector<8x4xf32>,
    return
  }
}

</mosaic_0001>

<bundles_post_ra>
// kernel: lstm_classifier_forward.1
= control target key start
LH: loop header
LB: loop body
LE: loop exit
PB: predicated region body
PF: predicated region fallthrough
CT: control target
= control target key end

     0   :  { %v2097_v1 = vmov 0   ;;  %vm110_vm0 = vcmask 261120   ;;  %v60_v6 = vlaneseq  ;;  %s2098_s24 = smov 64   ;;  %vm269_vm1 = vcmask 523264   ;;  %s2099_s11 = smov 32   ;;  %s2601_s1 = inlined_call_operand.vmem [shape: bf16[192,256], index: 1, kind: input, shape index: {}]   ;;  %s2602_s0 = inlined_call_operand.vmem [shape: bf16[64,32], index: 0, kind: input, shape index: {}]   ;;  %s2603_s2 = inlined_call_operand.vmem [shape: f32[72,256], index: 2, kind: input, shape index: {}]   ;;  %s2604_s3 = inlined_call_operand.vmem [shape: f32[8,4], index: 3, kind: output, shape index: {}]  }
   0x1   :  { %v1889_v0 = vld [vmem:[%s2601_s1 + $0x4] ss:$8 sps:$4 sm:$0xff]   ;;  %155 = vmatprep.mubr.bf16.mxu0 %v2097_v1  ;;  %305 = vmatprep.mubr.bf16.mxu1 %v2097_v1  ;;  %v1891_v2 = vld [vmem:[%s2601_s1] ss:$8 sps:$4 sm:$0xff]   ;;  %v1892_v3 = vld [vmem:[%s2601_s1 + $0x14] ss:$8 sps:$4 sm:$0xff]  }
   0x2   :  { %123 = vmatprep.subr.bf16.mxu0 %v1889_v0  ;;  %v1894_v4 = vld [vmem:[%s2601_s1 + $0x10] ss:$8 sps:$4 sm:$0xff]   ;;  %v1895_v5 = vld [vmem:[%s2602_s0] sm:$0xff]   ;;  %v2142_v7 = vshrl.u32 %v60_v6, 7  ;;  %v2177_v27 = vld [vmem:[%s2601_s1 + $0x34] ss:$8 sps:$4 sm:$0xff]  }
   0x3   :  { %124 = vmatpush1.bf16.msra.mxu0 %v1891_v2  ;;  %v39_v9 = vld [vmem:[%s2603_s2] ss:$8 sm:$0x3]  ;;  %v2167_v25 = vld [vmem:[%s2601_s1 + $0x24] ss:$8 sps:$4 sm:$0xff]   ;;  %vm223_vm2 = vcmask 523520  }
   0x4   :  { %125 = vmatprep.subr.bf16.mxu0 %v1892_v3  ;;  %v62_v8 = vsub.s32 0, %v2142_v7  ;;  %v66_v17 = vsub.s32 1, %v2142_v7  ;;  %v2172_v26 = vld [vmem:[%s2601_s1 + $0x20] ss:$8 sps:$4 sm:$0xff]   ;;  %273 = vmatprep.subr.bf16.mxu1 %v2167_v25  ;;  %v2185_v28 = vld [vmem:[%s2601_s1 + $0x30] ss:$8 sps:$4 sm:$0xff]  }
   0x5   :  { %274 = vmatpush1.bf16.msra.mxu1 %v2172_v26  ;;  %v2192_v29 = vld [vmem:[%s2601_s1 + $0x44] ss:$8 sps:$4 sm:$0xff]   ;;  %v2199_v30 = vld [vmem:[%s2601_s1 + $0x40] ss:$8 sps:$4 sm:$0xff]   ;;  %v2206_v31 = vld [vmem:[%s2601_s1 + $0x54] ss:$8 sps:$4 sm:$0xff]  }
   0x6   :  { %v2150_v10 = vrot.slane %v39_v9, %v62_v8  ;;  %v2160_v18 = vrot.slane %v39_v9, %v66_v17  ;;  %275 = vmatprep.subr.bf16.mxu1 %v2177_v27  ;;  %v2213_v32 = vld [vmem:[%s2601_s1 + $0x50] ss:$8 sps:$4 sm:$0xff]   ;;  %v1908_v58 = vld [vmem:[%s2602_s0 + $0x8] sm:$0xff]   ;;  %vm2101_vm3 = vmmov 0   ;;  %vm1668_vm4 = vcmask 31744  }
   0x7   :  { %126 = vmatpush1.bf16.msra.mxu0 %v1894_v4 }
   0x8   :  { %429 = vmatprep.subr.bf16.mxu0 %v2167_v25 }
   0x9   :  { %276 = vmatpush1.bf16.msra.mxu1 %v2185_v28 }
   0xa   :  { %1695 = vmatmul.mubr.msk.bf16.vlgmr.msra.gmra.mrb[0].mxu0 %vm110_vm0, %v1895_v5  ;;  %277 = vmatprep.subr.bf16.mxu1 %v2192_v29 }
   0xb   :  { %165 = vmatprep.mubr.bf16.mxu0 %v2097_v1  ;;  %430 = vmatpush1.bf16.msra.mxu0 %v2172_v26 }
   0xc   :  { %431 = vmatprep.subr.bf16.mxu0 %v2177_v27 }
   0xd   :  { %278 = vmatpush1.bf16.msra.mxu1 %v2199_v30 }
   0xe   :  { %279 = vmatprep.subr.bf16.mxu1 %v2206_v31 }
   0xf   :  { %432 = vmatpush1.bf16.msra.mxu0 %v2185_v28 }
  0x10   :  { %433 = vmatprep.subr.bf16.mxu0 %v2192_v29 }
  0x11   :  { %280 = vmatpush1.bf16.msra.mxu1 %v2213_v32 }
  0x12   :  { %351 = vmatprep.subr.bf16.mxu1 %v2167_v25  ;;  %1696 = vmatmul.mubr.msk.bf16.gmra.mrb[4].mxu0 %vm110_vm0, %v1908_v58 }
  0x13   :  { %434 = vmatpush1.bf16.msra.mxu0 %v2199_v30  ;;  %175 = vmatprep.mubr.bf16.mxu0 %v2097_v1 }
  0x14   :  { %435 = vmatprep.subr.bf16.mxu0 %v2206_v31 }
  0x17   :  { %436 = vmatpush1.bf16.msra.mxu0 %v2213_v32 }
  0x18   :  { %585 = vmatprep.subr.bf16.mxu0 %v2167_v25 }
  0xdd   :  { %v157_v11 = vpop.f32.mrb[0].mxu0 }
  0xde   :  { %v158_v12 = vadd.f32 %v157_v11, %v2150_v10  ;;  %v159_v13 = vpop.f32.mrb[1].mxu0 }
  0xdf   :  { %v2153_v14 = vpop.f32.mrb[2].mxu0  ;;  %v160_v19 = vadd.f32 %v159_v13, %v2160_v18 }
  0xe0   :  { %v1699_v15 = vmul.f32 -1.442695, %v158_v12  ;;  %v2155_v16 = vpop.f32.mrb[3].mxu0  ;;  %v162_v44 = vadd.f32 %v2153_v14, %v2150_v10 }
  0xe1   :  { %v1700_v33 = vmul.f32 -1.442695, %v160_v19  ;;  %v164_v45 = vadd.f32 %v2155_v16, %v2160_v18 }
  0xe2   :  { %1925 = vpow2.f32 %v1699_v15 }
  0xe3   :  { %1927 = vtanh.f32 %v160_v19 }
  0xe5   :  { %v167_v6 = vpop.f32.mrb[4].mxu0 }
  0xe6   :  { %v169_v9 = vpop.f32.mrb[5].mxu0  ;;  %v168_v14 = vadd.f32 %v167_v6, %v2150_v10 }
  0xe7   :  { %v2252_v11 = vpop.f32.mrb[6].mxu0  ;;  %v170_v15 = vadd.f32 %v169_v9, %v2160_v18 }
  0xe8   :  { %v2254_v12 = vpop.f32.mrb[7].mxu0 }
  0xec   :  { %v1926_v20 = vpop.eup %1925 }
  0xed   :  { %v202_v21 = vadd.f32 1.0, %v1926_v20  ;;  %v1928_v22 = vpop.eup %1927 }
  0xef   :  { %1929 = vrcp.f32 %v202_v21 }
  0xf0   :  { %1931 = vpow2.f32 %v1700_v33 }
  0xf9   :  { %v1930_v23 = vpop.eup %1929 }
  0xfa   :  { %v210_v24 = vmul.f32 %v1930_v23, %v1928_v22  ;;  %v1932_v34 = vpop.eup %1931  ;;  %v209_v36 = vmul.f32 0.0, %v1930_v23 }
  0xfb   :  { %v203_v35 = vadd.f32 1.0, %v1932_v34 }
  0xfc   :  { %212 = vrot.lane.b32.xlu0 %v210_v24, %s2098_s24 }
  0xfd   :  { %1933 = vrcp.f32 %v203_v35 }
 0x107   :  { %v1934_v39 = vpop.eup %1933 }
 0x16e   :  { %v213_v37 = vpop.permute.xlu0 %212 }
 0x16f   :  { %v215_v38 = vadd.f32 %v213_v37, %v209_v36 }
 0x171   :  { %1935 = vtanh.f32 %v215_v38 }
 0x17b   :  { %v1936_v40 = vpop.eup %1935 }
 0x17c   :  { %v2222_v41 = vmul.f32 %v1936_v40, %v1934_v39  ;;  %v1910_v39 = vld [vmem:[%s2602_s0 + $0x18] sm:$0xff]  }
 0x17e   :  { %v225_v42 = vpack.c.bf16 %v2222_v41, %v2222_v41 }
 0x180   :  { %227 = vrot.lane.b32.xlu0 %v225_v42, %s2098_s24 }
 0x1f2   :  { %v228_v43 = vpop.permute.xlu0 %227 }
 0x1f3   :  { %1709 = vmatmul.mubr.msk.bf16.vlgmr.msra.gmra.mrb[0].mxu1 %vm269_vm1, %v228_v43 }
 0x1f4   :  { %352 = vmatpush1.bf16.msra.mxu1 %v2172_v26  ;;  %383 = vmatprep.mubr.bf16.mxu1 %v2097_v1 }
 0x1f5   :  { %353 = vmatprep.subr.bf16.mxu1 %v2177_v27 }
 0x1f8   :  { %354 = vmatpush1.bf16.msra.mxu1 %v2185_v28 }
 0x1f9   :  { %355 = vmatprep.subr.bf16.mxu1 %v2192_v29 }
 0x1fc   :  { %356 = vmatpush1.bf16.msra.mxu1 %v2199_v30 }
 0x1fd   :  { %357 = vmatprep.subr.bf16.mxu1 %v2206_v31 }
 0x200   :  { %358 = vmatpush1.bf16.msra.mxu1 %v2213_v32 }
 0x201   :  { %507 = vmatprep.subr.bf16.mxu1 %v2167_v25 }
 0x2c6   :  { %v307_v46 = vpop.f32.mrb[0].mxu1 }
 0x2c7   :  { %v314_v47 = vadd.f32 %v307_v46, %v162_v44  ;;  %v309_v48 = vpop.f32.mrb[1].mxu1 }
 0x2c8   :  { %v315_v49 = vadd.f32 %v309_v48, %v164_v45  ;;  %v311_v50 = vpop.f32.mrb[2].mxu1 }
 0x2c9   :  { %v1710_v51 = vmul.f32 -1.442695, %v314_v47  ;;  %v312_v52 = vpop.f32.mrb[3].mxu1 }
 0x2ca   :  { %v1711_v59 = vmul.f32 -1.442695, %v315_v49 }
 0x2cb   :  { %1937 = vpow2.f32 %v1710_v51 }
 0x2cc   :  { %1939 = vtanh.f32 %v315_v49 }
 0x2d5   :  { %v1938_v53 = vpop.eup %1937 }
 0x2d6   :  { %v322_v54 = vadd.f32 1.0, %v1938_v53  ;;  %v1940_v55 = vpop.eup %1939 }
 0x2d8   :  { %1941 = vrcp.f32 %v322_v54 }
 0x2d9   :  { %1943 = vpow2.f32 %v1711_v59 }
 0x2e2   :  { %v1942_v56 = vpop.eup %1941 }
 0x2e3   :  { %v330_v57 = vmul.f32 %v1942_v56, %v1940_v55  ;;  %v1944_v60 = vpop.eup %1943  ;;  %v329_v62 = vmul.f32 %v1942_v56, %v215_v38  ;;  %v1909_v38 = vld [vmem:[%s2602_s0 + $0x10] sm:$0xff]  }
 0x2e4   :  { %v323_v61 = vadd.f32 1.0, %v1944_v60  ;;  %1697 = vmatmul.mubr.msk.bf16.gmra.mrb[8].mxu0 %vm110_vm0, %v1909_v38  ;;  %v172_v60 = vadd.f32 %v2252_v11, %v2150_v10 }
 0x2e5   :  { %332 = vrot.lane.b32.xlu1 %v330_v57, %s2098_s24  ;;  %185 = vmatprep.mubr.bf16.mxu0 %v2097_v1 }
 0x2e6   :  { %1945 = vrcp.f32 %v323_v61  ;;  %v174_v61 = vadd.f32 %v2254_v12, %v2160_v18 }
 0x2ec   :  { %1698 = vmatmul.mubr.msk.bf16.gmra.mrb[12].mxu0 %vm110_vm0, %v1910_v39 }
 0x2ed   :  { %461 = vmatprep.mubr.bf16.mxu0 %v2097_v1 }
 0x2f0   :  { %v1946_v2 = vpop.eup %1945 }
 0x357   :  { %v333_v63 = vpop.permute.xlu1 %332 }
 0x358   :  { %v335_v0 = vadd.f32 %v333_v63, %v329_v62 }
 0x35a   :  { %1947 = vtanh.f32 %v335_v0 }
 0x364   :  { %v1948_v3 = vpop.eup %1947 }
 0x365   :  { %v2247_v4 = vmul.f32 %v1948_v3, %v1946_v2 }
 0x367   :  { %v344_v5 = vpack.c.bf16 %v2247_v4, %v2247_v4 }
 0x369   :  { %346 = vrot.lane.b32.xlu1 %v344_v5, %s2098_s24 }
 0x3b7   :  { %v177_v51 = vpop.f32.mrb[8].mxu0 }
 0x3b8   :  { %v179_v52 = vpop.f32.mrb[9].mxu0 }
 0x3b9   :  { %v2284_v53 = vpop.f32.mrb[10].mxu0 }
 0x3ba   :  { %v2286_v54 = vpop.f32.mrb[11].mxu0 }
 0x3bf   :  { %v2288_v55 = vpop.f32.mrb[12].mxu0 }
 0x3c0   :  { %v2290_v56 = vpop.f32.mrb[13].mxu0 }
 0x3c1   :  { %v2292_v57 = vpop.f32.mrb[14].mxu0 }
 0x3c2   :  { %v2294_v58 = vpop.f32.mrb[15].mxu0 }
 0x3db   :  { %v347_v13 = vpop.permute.xlu1 %346 }
 0x3dc   :  { %1712 = vmatmul.mubr.msk.bf16.vlgmr.msra.gmra.mrb[4].mxu1 %vm269_vm1, %v347_v13 }
 0x3dd   :  { %508 = vmatpush1.bf16.msra.mxu1 %v2172_v26  ;;  %539 = vmatprep.mubr.bf16.mxu1 %v2097_v1 }
 0x3de   :  { %509 = vmatprep.subr.bf16.mxu1 %v2177_v27 }
 0x3e1   :  { %510 = vmatpush1.bf16.msra.mxu1 %v2185_v28 }
 0x3e2   :  { %511 = vmatprep.subr.bf16.mxu1 %v2192_v29 }
 0x3e5   :  { %512 = vmatpush1.bf16.msra.mxu1 %v2199_v30 }
 0x3e6   :  { %513 = vmatprep.subr.bf16.mxu1 %v2206_v31 }
 0x3e9   :  { %514 = vmatpush1.bf16.msra.mxu1 %v2213_v32 }
 0x3ea   :  { %663 = vmatprep.subr.bf16.mxu1 %v2167_v25 }
 0x4af   :  { %v385_v16 = vpop.f32.mrb[4].mxu1 }
 0x4b0   :  { %v392_v19 = vadd.f32 %v385_v16, %v168_v14  ;;  %v387_v20 = vpop.f32.mrb[5].mxu1 }
 0x4b1   :  { %v393_v21 = vadd.f32 %v387_v20, %v170_v15  ;;  %v389_v22 = vpop.f32.mrb[6].mxu1 }
 0x4b2   :  { %v1713_v23 = vmul.f32 -1.442695, %v392_v19  ;;  %v390_v24 = vpop.f32.mrb[7].mxu1 }
 0x4b3   :  { %v1714_v40 = vmul.f32 -1.442695, %v393_v21 }
 0x4b4   :  { %1949 = vpow2.f32 %v1713_v23 }
 0x4b5   :  { %1951 = vtanh.f32 %v393_v21 }
 0x4be   :  { %v1950_v33 = vpop.eup %1949 }
 0x4bf   :  { %v400_v34 = vadd.f32 1.0, %v1950_v33  ;;  %v1952_v35 = vpop.eup %1951 }
 0x4c1   :  { %1953 = vrcp.f32 %v400_v34 }
 0x4c2   :  { %1955 = vpow2.f32 %v1714_v40 }
 0x4cb   :  { %v1954_v36 = vpop.eup %1953 }
 0x4cc   :  { %v408_v37 = vmul.f32 %v1954_v36, %v1952_v35  ;;  %v1956_v42 = vpop.eup %1955  ;;  %v407_v44 = vmul.f32 %v1954_v36, %v335_v0  ;;  %v178_v35 = vadd.f32 %v177_v51, %v2150_v10  ;;  %v180_v36 = vadd.f32 %v179_v52, %v2160_v18 }
 0x4cd   :  { %v401_v43 = vadd.f32 1.0, %v1956_v42 }
 0x4ce   :  { %410 = vrot.lane.b32.xlu0 %v408_v37, %s2098_s24 }
 0x4cf   :  { %1957 = vrcp.f32 %v401_v43 }
 0x4d9   :  { %v1958_v47 = vpop.eup %1957 }
 0x540   :  { %v411_v45 = vpop.permute.xlu0 %410 }
 0x541   :  { %v413_v46 = vadd.f32 %v411_v45, %v407_v44 }
 0x543   :  { %1959 = vtanh.f32 %v413_v46 }
 0x54d   :  { %v1960_v48 = vpop.eup %1959 }
 0x54e   :  { %v2279_v49 = vmul.f32 %v1960_v48, %v1958_v47 }
 0x550   :  { %v422_v50 = vpack.c.bf16 %v2279_v49, %v2279_v49 }
 0x552   :  { %424 = vrot.lane.b32.xlu1 %v422_v50, %s2098_s24 }
 0x5c4   :  { %v425_v59 = vpop.permute.xlu1 %424 }
 0x5c5   :  { %1715 = vmatmul.mubr.msk.bf16.vlgmr.msra.gmra.mrb[16].mxu0 %vm269_vm1, %v425_v59 }
 0x5c6   :  { %586 = vmatpush1.bf16.msra.mxu0 %v2172_v26  ;;  %617 = vmatprep.mubr.bf16.mxu0 %v2097_v1 }
 0x5c7   :  { %587 = vmatprep.subr.bf16.mxu0 %v2177_v27 }
 0x5ca   :  { %588 = vmatpush1.bf16.msra.mxu0 %v2185_v28 }
 0x5cb   :  { %589 = vmatprep.subr.bf16.mxu0 %v2192_v29 }
 0x5ce   :  { %590 = vmatpush1.bf16.msra.mxu0 %v2199_v30 }
 0x5cf   :  { %591 = vmatprep.subr.bf16.mxu0 %v2206_v31 }
 0x5d2   :  { %592 = vmatpush1.bf16.msra.mxu0 %v2213_v32 }
 0x5d3   :  { %741 = vmatprep.subr.bf16.mxu0 %v2167_v25 }
 0x698   :  { %v463_v62 = vpop.f32.mrb[16].mxu0 }
 0x699   :  { %v470_v63 = vadd.f32 %v463_v62, %v172_v60  ;;  %v465_v0 = vpop.f32.mrb[17].mxu0 }
 0x69a   :  { %v471_v2 = vadd.f32 %v465_v0, %v174_v61  ;;  %v467_v3 = vpop.f32.mrb[18].mxu0 }
 0x69b   :  { %v1716_v5 = vmul.f32 -1.442695, %v470_v63  ;;  %v468_v6 = vpop.f32.mrb[19].mxu0 }
 0x69c   :  { %v1717_v11 = vmul.f32 -1.442695, %v471_v2  ;;  %v182_v6 = vadd.f32 %v2284_v53, %v2150_v10 }
 0x69d   :  { %1961 = vpow2.f32 %v1716_v5 }
 0x69e   :  { %1963 = vtanh.f32 %v471_v2 }
 0x6a7   :  { %v1962_v9 = vpop.eup %1961 }
 0x6a8   :  { %v478_v13 = vadd.f32 1.0, %v1962_v9  ;;  %v1964_v14 = vpop.eup %1963 }
 0x6aa   :  { %1965 = vrcp.f32 %v478_v13 }
 0x6ab   :  { %1967 = vpow2.f32 %v1717_v11 }
 0x6b4   :  { %v1966_v25 = vpop.eup %1965 }
 0x6b5   :  { %v486_v15 = vmul.f32 %v1966_v25, %v1964_v14  ;;  %v1968_v12 = vpop.eup %1967  ;;  %v485_v19 = vmul.f32 %v1966_v25, %v413_v46 }
 0x6b6   :  { %v479_v16 = vadd.f32 1.0, %v1968_v12 }
 0x6b7   :  { %488 = vrot.lane.b32.xlu0 %v486_v15, %s2098_s24 }
 0x6b8   :  { %1969 = vrcp.f32 %v479_v16 }
 0x6c2   :  { %v1970_v22 = vpop.eup %1969 }
 0x729   :  { %v489_v20 = vpop.permute.xlu0 %488 }
 0x72a   :  { %v491_v21 = vadd.f32 %v489_v20, %v485_v19 }
 0x72c   :  { %1971 = vtanh.f32 %v491_v21 }
 0x736   :  { %v1972_v23 = vpop.eup %1971 }
 0x737   :  { %v2311_v24 = vmul.f32 %v1972_v23, %v1970_v22 }
 0x739   :  { %v500_v33 = vpack.c.bf16 %v2311_v24, %v2311_v24 }
 0x73b   :  { %502 = vrot.lane.b32.xlu1 %v500_v33, %s2098_s24 }
 0x7ad   :  { %v503_v34 = vpop.permute.xlu1 %502 }
 0x7ae   :  { %1718 = vmatmul.mubr.msk.bf16.vlgmr.msra.gmra.mrb[8].mxu1 %vm269_vm1, %v503_v34 }
 0x7af   :  { %664 = vmatpush1.bf16.msra.mxu1 %v2172_v26  ;;  %695 = vmatprep.mubr.bf16.mxu1 %v2097_v1 }
 0x7b0   :  { %665 = vmatprep.subr.bf16.mxu1 %v2177_v27 }
 0x7b3   :  { %666 = vmatpush1.bf16.msra.mxu1 %v2185_v28 }
 0x7b4   :  { %667 = vmatprep.subr.bf16.mxu1 %v2192_v29 }
 0x7b7   :  { %668 = vmatpush1.bf16.msra.mxu1 %v2199_v30 }
 0x7b8   :  { %669 = vmatprep.subr.bf16.mxu1 %v2206_v31 }
 0x7bb   :  { %670 = vmatpush1.bf16.msra.mxu1 %v2213_v32 }
 0x881   :  { %v541_v37 = vpop.f32.mrb[8].mxu1 }
 0x882   :  { %v548_v38 = vadd.f32 %v541_v37, %v178_v35  ;;  %v543_v39 = vpop.f32.mrb[9].mxu1  ;;  %v188_v35 = vadd.f32 %v2288_v55, %v2150_v10 }
 0x883   :  { %v549_v40 = vadd.f32 %v543_v39, %v180_v36  ;;  %v545_v42 = vpop.f32.mrb[10].mxu1  ;;  %v190_v36 = vadd.f32 %v2290_v56, %v2160_v18 }
 0x884   :  { %v1719_v43 = vmul.f32 -1.442695, %v548_v38  ;;  %v546_v44 = vpop.f32.mrb[11].mxu1 }
 0x885   :  { %v1720_v51 = vmul.f32 -1.442695, %v549_v40 }
 0x886   :  { %1973 = vpow2.f32 %v1719_v43 }
 0x887   :  { %1975 = vtanh.f32 %v549_v40 }
 0x890   :  { %v1974_v45 = vpop.eup %1973 }
 0x891   :  { %v556_v46 = vadd.f32 1.0, %v1974_v45  ;;  %v1976_v47 = vpop.eup %1975 }
 0x893   :  { %1977 = vrcp.f32 %v556_v46 }
 0x894   :  { %1979 = vpow2.f32 %v1720_v51 }
 0x89d   :  { %v1978_v48 = vpop.eup %1977 }
 0x89e   :  { %v564_v50 = vmul.f32 %v1978_v48, %v1976_v47  ;;  %v1980_v52 = vpop.eup %1979  ;;  %v563_v60 = vmul.f32 %v1978_v48, %v491_v21 }
 0x89f   :  { %v557_v59 = vadd.f32 1.0, %v1980_v52 }
 0x8a0   :  { %566 = vrot.lane.b32.xlu0 %v564_v50, %s2098_s24 }
 0x8a1   :  { %1981 = vrcp.f32 %v557_v59 }
 0x8ab   :  { %v1982_v63 = vpop.eup %1981 }
 0x912   :  { %v567_v61 = vpop.permute.xlu0 %566 }
 0x913   :  { %v569_v62 = vadd.f32 %v567_v61, %v563_v60 }
 0x915   :  { %1983 = vtanh.f32 %v569_v62 }
 0x91f   :  { %v1984_v0 = vpop.eup %1983 }
 0x920   :  { %v2328_v2 = vmul.f32 %v1984_v0, %v1982_v63 }
 0x922   :  { %v578_v3 = vpack.c.bf16 %v2328_v2, %v2328_v2 }
 0x924   :  { %580 = vrot.lane.b32.xlu1 %v578_v3, %s2098_s24 }
 0x996   :  { %v581_v5 = vpop.permute.xlu1 %580 }
 0x997   :  { %1721 = vmatmul.mubr.msk.bf16.vlgmr.msra.gmra.mrb[20].mxu0 %vm269_vm1, %v581_v5 }
 0x998   :  { %742 = vmatpush1.bf16.msra.mxu0 %v2172_v26  ;;  %773 = vmatprep.mubr.bf16.mxu0 %v2097_v1  ;;  %v184_v26 = vadd.f32 %v2286_v54, %v2160_v18 }
 0x999   :  { %743 = vmatprep.subr.bf16.mxu0 %v2177_v27 }
 0x99c   :  { %744 = vmatpush1.bf16.msra.mxu0 %v2185_v28 }
 0x99d   :  { %745 = vmatprep.subr.bf16.mxu0 %v2192_v29 }
 0x9a0   :  { %746 = vmatpush1.bf16.msra.mxu0 %v2199_v30 }
 0x9a1   :  { %747 = vmatprep.subr.bf16.mxu0 %v2206_v31 }
 0x9a4   :  { %748 = vmatpush1.bf16.msra.mxu0 %v2213_v32 }
 0xa6a   :  { %v619_v9 = vpop.f32.mrb[20].mxu0 }
 0xa6b   :  { %v626_v13 = vadd.f32 %v619_v9, %v182_v6  ;;  %v621_v14 = vpop.f32.mrb[21].mxu0  ;;  %v192_v6 = vadd.f32 %v2292_v57, %v2150_v10  ;;  %v1911_v10 = vld [vmem:[%s2601_s1 + $0x60] ss:$8 sps:$4 sm:$0xff]   ;;  %v1916_v57 = vld [vmem:[%s2601_s1 + $0x74] ss:$8 sps:$4 sm:$0xff]  }
 0xa6c   :  { %v627_v27 = vadd.f32 %v621_v14, %v184_v26  ;;  %v623_v25 = vpop.f32.mrb[22].mxu0  ;;  %v194_v26 = vadd.f32 %v2294_v58, %v2160_v18  ;;  %v1913_v18 = vld [vmem:[%s2601_s1 + $0x64] ss:$8 sps:$4 sm:$0xff]   ;;  %v1914_v58 = vld [vmem:[%s2601_s1 + $0x70] ss:$8 sps:$4 sm:$0xff]  }
 0xa6d   :  { %v1722_v28 = vmul.f32 -1.442695, %v626_v13  ;;  %v624_v15 = vpop.f32.mrb[23].mxu0  ;;  %887 = vmatprep.subr.bf16.mxu1 %v1913_v18 }
 0xa6e   :  { %v1723_v53 = vmul.f32 -1.442695, %v627_v27 }
 0xa6f   :  { %1985 = vpow2.f32 %v1722_v28 }
 0xa70   :  { %1987 = vtanh.f32 %v627_v27 }
 0xa79   :  { %v1986_v29 = vpop.eup %1985 }
 0xa7a   :  { %v634_v30 = vadd.f32 1.0, %v1986_v29  ;;  %v1988_v31 = vpop.eup %1987 }
 0xa7c   :  { %1989 = vrcp.f32 %v634_v30 }
 0xa7d   :  { %1991 = vpow2.f32 %v1723_v53 }
 0xa86   :  { %v1990_v32 = vpop.eup %1989 }
 0xa87   :  { %v642_v11 = vmul.f32 %v1990_v32, %v1988_v31  ;;  %v1992_v54 = vpop.eup %1991  ;;  %v641_v16 = vmul.f32 %v1990_v32, %v569_v62 }
 0xa88   :  { %v635_v12 = vadd.f32 1.0, %v1992_v54 }
 0xa89   :  { %644 = vrot.lane.b32.xlu0 %v642_v11, %s2098_s24 }
 0xa8a   :  { %1993 = vrcp.f32 %v635_v12 }
 0xa94   :  { %v1994_v21 = vpop.eup %1993 }
 0xafb   :  { %v645_v19 = vpop.permute.xlu0 %644 }
 0xafc   :  { %v647_v20 = vadd.f32 %v645_v19, %v641_v16 }
 0xafe   :  { %1995 = vtanh.f32 %v647_v20 }
 0xb08   :  { %v1996_v22 = vpop.eup %1995 }
 0xb09   :  { %v2347_v23 = vmul.f32 %v1996_v22, %v1994_v21  ;;  %v1922_v22 = vld [vmem:[%s2601_s1 + $0x94] ss:$8 sps:$4 sm:$0xff]  }
 0xb0b   :  { %v656_v33 = vpack.c.bf16 %v2347_v23, %v2347_v23 }
 0xb0d   :  { %658 = vrot.lane.b32.xlu1 %v656_v33, %s2098_s24 }
 0xb7f   :  { %v659_v34 = vpop.permute.xlu1 %658 }
 0xb80   :  { %1724 = vmatmul.mubr.msk.bf16.vlgmr.msra.gmra.mrb[12].mxu1 %vm269_vm1, %v659_v34  ;;  %v1920_v34 = vld [vmem:[%s2601_s1 + $0x90] ss:$8 sps:$4 sm:$0xff]  }
 0xb81   :  { %919 = vmatprep.mubr.bf16.mxu1 %v2097_v1  ;;  %888 = vmatpush1.bf16.msra.mxu1 %v1911_v10 }
 0xb82   :  { %889 = vmatprep.subr.bf16.mxu1 %v1916_v57 }
 0xb85   :  { %890 = vmatpush1.bf16.msra.mxu1 %v1914_v58 }
 0xc53   :  { %v697_v37 = vpop.f32.mrb[12].mxu1 }
 0xc54   :  { %v704_v38 = vadd.f32 %v697_v37, %v188_v35  ;;  %v699_v39 = vpop.f32.mrb[13].mxu1 }
 0xc55   :  { %v705_v40 = vadd.f32 %v699_v39, %v190_v36  ;;  %v701_v42 = vpop.f32.mrb[14].mxu1 }
 0xc56   :  { %v1725_v43 = vmul.f32 -1.442695, %v704_v38  ;;  %v702_v44 = vpop.f32.mrb[15].mxu1 }
 0xc57   :  { %v1726_v55 = vmul.f32 -1.442695, %v705_v40 }
 0xc58   :  { %1997 = vpow2.f32 %v1725_v43  ;;  %v2409_v43 = vld [vmem:[%s2603_s2 + $0x1] ss:$8 sm:$0x3] }
 0xc59   :  { %1999 = vtanh.f32 %v705_v40  ;;  %v2414_v44 = vrot.slane %v2409_v43, %v62_v8 }
 0xc62   :  { %v1998_v45 = vpop.eup %1997 }
 0xc63   :  { %v712_v46 = vadd.f32 1.0, %v1998_v45  ;;  %v2000_v47 = vpop.eup %1999 }
 0xc65   :  { %2001 = vrcp.f32 %v712_v46 }
 0xc66   :  { %2003 = vpow2.f32 %v1726_v55 }
 0xc6f   :  { %v2002_v48 = vpop.eup %2001 }
 0xc70   :  { %v720_v50 = vmul.f32 %v2002_v48, %v2000_v47  ;;  %v2004_v56 = vpop.eup %2003  ;;  %v719_v52 = vmul.f32 %v2002_v48, %v647_v20  ;;  %v1919_v20 = vld [vmem:[%s2601_s1 + $0x84] ss:$8 sps:$4 sm:$0xff]  }
 0xc71   :  { %v713_v51 = vadd.f32 1.0, %v2004_v56  ;;  %891 = vmatprep.subr.bf16.mxu1 %v1919_v20 }
 0xc72   :  { %722 = vrot.lane.b32.xlu0 %v720_v50, %s2098_s24 }
 0xc73   :  { %2005 = vrcp.f32 %v713_v51 }
 0xc7d   :  { %v2006_v61 = vpop.eup %2005 }
 0xce4   :  { %v723_v59 = vpop.permute.xlu0 %722 }
 0xce5   :  { %v725_v60 = vadd.f32 %v723_v59, %v719_v52 }
 0xce7   :  { %2007 = vtanh.f32 %v725_v60 }
 0xcf1   :  { %v2008_v62 = vpop.eup %2007 }
 0xcf2   :  { %v727_v63 = vmul.f32 %v2008_v62, %v2006_v61 }
 0xcf4   :  { %v734_v0 = vpack.c.bf16 %v727_v63, %v727_v63 }
 0xcf6   :  { %736 = vrot.lane.b32.xlu1 %v734_v0, %s2098_s24  ;;  %v2422_v0 = vld [vmem:[%s2601_s1 + $0xa0] ss:$8 sps:$4 sm:$0xff]  }
 0xcfa   :  { %219 = vrot.lane.b32.xlu1 %v2222_v41, %s2098_s24 }
 0xcfe   :  { %729 = vrot.lane.b32.xlu1 %v727_v63, %s2098_s24 }
 0xd68   :  { %v737_v3 = vpop.permute.xlu1 %736 }
 0xd69   :  { %1727 = vmatmul.mubr.msk.bf16.vlgmr.msra.gmra.mrb[24].mxu0 %vm269_vm1, %v737_v3  ;;  %v2100_v3 = vmov 0.0  }
 0xd6a   :  { %1793 = vmatprep.subr.bf16.mxu0 %v2100_v3  ;;  %1797 = vmatprep.mubr.msk.bf16.mxu0 %vm2101_vm3, %v2100_v3 }
 0xd6b   :  { %1794 = vmatpush3.bf16.msra.mxu0 %v2422_v0 }
 0xd6c   :  { %v220_v5 = vpop.permute.xlu1 %219  ;;  %1795 = vmatprep.subr.bf16.mxu0 %v2100_v3 }
 0xd6d   :  { %222 = vst.msk [vmem:[#allocation2] sm:$0xff] %vm110_vm0, %v220_v5 }
 0xd6e   :  { %224 = vst.msk [vmem:[#allocation2 + $0x38] sm:$0xff] %vm223_vm2, %v220_v5  ;;  %v2431_v5 = vld [vmem:[%s2601_s1 + $0xb0] ss:$8 sps:$4 sm:$0xff]  }
 0xd6f   :  { %1796 = vmatpush3.bf16.msra.mxu0 %v2431_v5 }
 0xd70   :  { %v730_v33 = vpop.permute.xlu1 %729  ;;  %1801 = vmatprep.subr.bf16.mxu0 %v2100_v3 }
 0xe3c   :  { %v775_v9 = vpop.f32.mrb[24].mxu0 }
 0xe3d   :  { %v782_v13 = vadd.f32 %v775_v9, %v192_v6  ;;  %v777_v41 = vpop.f32.mrb[25].mxu0 }
 0xe3e   :  { %v783_v14 = vadd.f32 %v777_v41, %v194_v26  ;;  %v779_v27 = vpop.f32.mrb[26].mxu0 }
 0xe3f   :  { %v1728_v25 = vmul.f32 -1.442695, %v782_v13  ;;  %v780_v28 = vpop.f32.mrb[27].mxu0 }
 0xe40   :  { %v1729_v11 = vmul.f32 -1.442695, %v783_v14 }
 0xe41   :  { %2009 = vpow2.f32 %v1728_v25 }
 0xe42   :  { %2011 = vtanh.f32 %v783_v14 }
 0xe4b   :  { %v2010_v15 = vpop.eup %2009 }
 0xe4c   :  { %v790_v29 = vadd.f32 1.0, %v2010_v15  ;;  %v2012_v30 = vpop.eup %2011 }
 0xe4e   :  { %2013 = vrcp.f32 %v790_v29 }
 0xe4f   :  { %2015 = vpow2.f32 %v1729_v11 }
 0xe58   :  { %v2014_v31 = vpop.eup %2013 }
 0xe59   :  { %v798_v32 = vmul.f32 %v2014_v31, %v2012_v30  ;;  %v2016_v53 = vpop.eup %2015  ;;  %v797_v12 = vmul.f32 %v2014_v31, %v725_v60 }
 0xe5a   :  { %v791_v54 = vadd.f32 1.0, %v2016_v53 }
 0xe5b   :  { %800 = vrot.lane.b32.xlu0 %v798_v32, %s2098_s24 }
 0xe5c   :  { %2017 = vrcp.f32 %v791_v54 }
 0xe5f   :  { %339 = vrot.lane.b32.xlu0 %v2247_v4, %s2098_s24  ;;  %v1917_v4 = vld [vmem:[%s2601_s1 + $0x80] ss:$8 sps:$4 sm:$0xff]  }
 0xe60   :  { %892 = vmatpush1.bf16.msra.mxu1 %v1917_v4 }
 0xe61   :  { %893 = vmatprep.subr.bf16.mxu1 %v1922_v22 }
 0xe64   :  { %894 = vmatpush1.bf16.msra.mxu1 %v1920_v34 }
 0xe65   :  { %1833 = vmatprep.subr.bf16.mxu1 %v2100_v3 }
 0xe66   :  { %v2018_v35 = vpop.eup %2017 }
 0xecd   :  { %v801_v16 = vpop.permute.xlu0 %800 }
 0xece   :  { %v803_v19 = vadd.f32 %v801_v16, %v797_v12 }
 0xed0   :  { %2019 = vtanh.f32 %v803_v19 }
 0xed1   :  { %v340_v21 = vpop.permute.xlu0 %339 }
 0xed2   :  { %342 = vst.msk [vmem:[#allocation2 + $0x8] sm:$0xff] %vm110_vm0, %v340_v21 }
 0xed3   :  { %343 = vst.msk [vmem:[#allocation2 + $0x30] sm:$0xff] %vm223_vm2, %v340_v21  ;;  %733 = vst.msk [vmem:[#allocation2 + $0x8] sm:$0xff] %vm223_vm2, %v730_v33 }
 0xed4   :  { %732 = vst.msk [vmem:[#allocation2 + $0x30] sm:$0xff] %vm110_vm0, %v730_v33 }
 0xeda   :  { %v2020_v36 = vpop.eup %2019  ;;  %v813_v40 = vld [vmem:[#allocation2 + $0x8] sm:$0xff] }
 0xedb   :  { %v805_v37 = vmul.f32 %v2020_v36, %v2018_v35 }
 0xedd   :  { %807 = vrot.lane.b32.xlu0 %v805_v37, %s2098_s24  ;;  %v818_v37 = vld [vmem:[#allocation2 + $0x30] sm:$0xff] }
 0xf4f   :  { %v808_v38 = vpop.permute.xlu0 %807 }
 0xf50   :  { %810 = vst.msk [vmem:[#allocation2 + $0x38] sm:$0xff] %vm110_vm0, %v808_v38 }
 0xf51   :  { %811 = vst.msk [vmem:[#allocation2] sm:$0xff] %vm223_vm2, %v808_v38 }
 0xf57   :  { %v819_v36 = vld [vmem:[#allocation2 + $0x38] sm:$0xff] }
 0xf58   :  { %v812_v39 = vld [vmem:[#allocation2] sm:$0xff]  ;;  %v823_v38 = vpack.c.bf16 %v819_v36, %v818_v37 }
 0xf59   :  { %v820_v42 = vpack.c.bf16 %v813_v40, %v812_v39 }
 0xf5b   :  { %1738 = vmatmul.mubr.msk.bf16.vlgmr.msra.gmra.mrb[16].mxu1 %vm269_vm1, %v820_v42 }
 0xf5c   :  { %927 = vmatprep.mubr.bf16.mxu1 %v2097_v1  ;;  %1834 = vmatpush3.bf16.msra.mxu1 %v2422_v0 }
 0xf5d   :  { %1835 = vmatprep.subr.bf16.mxu1 %v2100_v3 }
 0xf60   :  { %1836 = vmatpush3.bf16.msra.mxu1 %v2431_v5 }
0x102e   :  { %v921_v45 = vpop.f32.mrb[16].mxu1 }
0x102f   :  { %v922_v46 = vadd.f32 %v921_v45, %v2414_v44  ;;  %v923_v47 = vpop.f32.mrb[17].mxu1 }
0x1030   :  { %v924_v48 = vpop.f32.mrb[18].mxu1 }
0x1031   :  { %2021 = vtanh.f32 %v922_v46  ;;  %v926_v50 = vpop.f32.mrb[19].mxu1  ;;  %v1742_v56 = vmul.f32 -1.442695, %v922_v46  ;;  %v925_v14 = vadd.f32 %v924_v48, %v2414_v44 }
0x1033   :  { %2023 = vpow2.f32 %v1742_v56 }
0x103b   :  { %v2022_v55 = vpop.eup %2021 }
0x103c   :  { %962 = vrot.lane.b32.xlu1 %v2022_v55, %s2098_s24 }
0x103d   :  { %v2024_v51 = vpop.eup %2023 }
0x103e   :  { %v956_v52 = vadd.f32 1.0, %v2024_v51 }
0x1040   :  { %2025 = vrcp.f32 %v956_v52 }
0x104a   :  { %v2026_v59 = vpop.eup %2025 }
0x104b   :  { %v960_v8 = vmul.f32 0.0, %v2026_v59 }
0x10ae   :  { %v963_v60 = vpop.permute.xlu1 %962 }
0x10af   :  { %v965_v61 = vmul.f32 %v2026_v59, %v963_v60 }
0x10b1   :  { %967 = vrot.lane.b32.xlu0 %v965_v61, %s2099_s11 }
0x1123   :  { %v968_v62 = vpop.permute.xlu0 %967 }
0x1124   :  { %v970_v63 = vadd.f32 %v968_v62, %v960_v8 }
0x1126   :  { %2027 = vtanh.f32 %v970_v63 }
0x1130   :  { %v2028_v6 = vpop.eup %2027 }
0x1131   :  { %973 = vrot.lane.b32.xlu1 %v2028_v6, %s2098_s24 }
0x11a3   :  { %v974_v26 = vpop.permute.xlu1 %973 }
0x11a4   :  { %v976_v9 = vmul.f32 %v2026_v59, %v974_v26 }
0x11a6   :  { %v977_v13 = vpack.c.bf16 %v976_v9, %v976_v9 }
0x11a8   :  { %979 = vrot.lane.b32.xlu0 %v977_v13, %s2099_s11 }
0x121a   :  { %v980_v41 = vpop.permute.xlu0 %979 }
0x121b   :  { %1798 = vmatmul.mubr.msk.bf16.vlgmr.msra.gmra.mrb[28].mxu0 %vm110_vm0, %v980_v41 }
0x121c   :  { %1802 = vmatpush3.bf16.msra.mxu0 %v2422_v0  ;;  %1805 = vmatprep.mubr.msk.bf16.mxu0 %vm2101_vm3, %v2100_v3 }
0x121d   :  { %1803 = vmatprep.subr.bf16.mxu0 %v2100_v3 }
0x1220   :  { %1804 = vmatpush3.bf16.msra.mxu0 %v2431_v5 }
0x1221   :  { %1809 = vmatprep.subr.bf16.mxu0 %v2100_v3 }
0x12ee   :  { %v1030_v27 = vpop.f32.mrb[28].mxu0 }
0x12ef   :  { %v1036_v25 = vadd.f32 %v1030_v27, %v925_v14  ;;  %v1799_v28 = vpop.f32.mrb[29].mxu0 }
0x12f0   :  { %v1033_v15 = vpop.f32.mrb[30].mxu0 }
0x12f1   :  { %2029 = vtanh.f32 %v1036_v25  ;;  %v1800_v29 = vpop.f32.mrb[31].mxu0  ;;  %v1746_v31 = vmul.f32 -1.442695, %v1036_v25 }
0x12f3   :  { %2031 = vpow2.f32 %v1746_v31 }
0x12fb   :  { %v2030_v30 = vpop.eup %2029 }
0x12fc   :  { %1046 = vrot.lane.b32.xlu1 %v2030_v30, %s2098_s24 }
0x12fd   :  { %v2032_v32 = vpop.eup %2031 }
0x12fe   :  { %v1040_v10 = vadd.f32 1.0, %v2032_v32 }
0x1300   :  { %2033 = vrcp.f32 %v1040_v10 }
0x130a   :  { %v2034_v18 = vpop.eup %2033 }
0x130b   :  { %v1044_v11 = vmul.f32 %v2034_v18, %v970_v63 }
0x136e   :  { %v1047_v57 = vpop.permute.xlu1 %1046 }
0x136f   :  { %v1049_v58 = vmul.f32 %v2034_v18, %v1047_v57 }
0x1371   :  { %1051 = vrot.lane.b32.xlu0 %v1049_v58, %s2099_s11 }
0x1375   :  { %417 = vrot.lane.b32.xlu0 %v2279_v49, %s2098_s24 }
0x1379   :  { %573 = vrot.lane.b32.xlu0 %v2328_v2, %s2098_s24 }
0x13e3   :  { %v1052_v53 = vpop.permute.xlu0 %1051 }
0x13e4   :  { %v2456_v54 = vadd.f32 %v1052_v53, %v1044_v11 }
0x13e6   :  { %2035 = vtanh.f32 %v2456_v54 }
0x13e7   :  { %v418_v12 = vpop.permute.xlu0 %417 }
0x13e8   :  { %420 = vst.msk [vmem:[#allocation2 + $0x10] sm:$0xff] %vm110_vm0, %v418_v12 }
0x13e9   :  { %421 = vst.msk [vmem:[#allocation2 + $0x28] sm:$0xff] %vm223_vm2, %v418_v12 }
0x13eb   :  { %v574_v20 = vpop.permute.xlu0 %573 }
0x13f0   :  { %v2036_v16 = vpop.eup %2035 }
0x13f1   :  { %1057 = vrot.lane.b32.xlu1 %v2036_v16, %s2098_s24 }
0x13f5   :  { %495 = vrot.lane.b32.xlu1 %v2311_v24, %s2098_s24 }
0x13f9   :  { %651 = vrot.lane.b32.xlu1 %v2347_v23, %s2098_s24 }
0x1463   :  { %v1058_v49 = vpop.permute.xlu1 %1057 }
0x1464   :  { %v1060_v2 = vmul.f32 %v2034_v18, %v1058_v49 }
0x1466   :  { %v1061_v19 = vpack.c.bf16 %v1060_v2, %v1060_v2 }
0x1467   :  { %v496_v4 = vpop.permute.xlu1 %495 }
0x1468   :  { %498 = vst.msk [vmem:[#allocation2 + $0x18] sm:$0xff] %vm110_vm0, %v496_v4  ;;  %1063 = vrot.lane.b32.xlu0 %v1061_v19, %s2099_s11 }
0x1469   :  { %499 = vst.msk [vmem:[#allocation2 + $0x20] sm:$0xff] %vm223_vm2, %v496_v4  ;;  %577 = vst.msk [vmem:[#allocation2 + $0x18] sm:$0xff] %vm223_vm2, %v574_v20 }
0x146a   :  { %576 = vst.msk [vmem:[#allocation2 + $0x20] sm:$0xff] %vm110_vm0, %v574_v20 }
0x146b   :  { %v652_v21 = vpop.permute.xlu1 %651 }
0x146c   :  { %654 = vst.msk [vmem:[#allocation2 + $0x28] sm:$0xff] %vm110_vm0, %v652_v21 }
0x146d   :  { %655 = vst.msk [vmem:[#allocation2 + $0x10] sm:$0xff] %vm223_vm2, %v652_v21 }
0x1470   :  { %v815_v23 = vld [vmem:[#allocation2 + $0x18] sm:$0xff] }
0x1471   :  { %v816_v34 = vld [vmem:[#allocation2 + $0x20] sm:$0xff] }
0x1473   :  { %v817_v33 = vld [vmem:[#allocation2 + $0x28] sm:$0xff] }
0x1474   :  { %v814_v24 = vld [vmem:[#allocation2 + $0x10] sm:$0xff]  ;;  %v822_v35 = vpack.c.bf16 %v817_v33, %v816_v34 }
0x1475   :  { %v821_v22 = vpack.c.bf16 %v815_v23, %v814_v24 }
0x1477   :  { %1739 = vmatmul.mubr.msk.bf16.gmra.mrb[20].mxu1 %vm269_vm1, %v821_v22 }
0x1478   :  { %935 = vmatprep.mubr.bf16.mxu1 %v2097_v1 }
0x147f   :  { %1740 = vmatmul.mubr.msk.bf16.gmra.mrb[24].mxu1 %vm269_vm1, %v822_v35 }
0x1480   :  { %943 = vmatprep.mubr.bf16.mxu1 %v2097_v1 }
0x1487   :  { %1741 = vmatmul.mubr.msk.bf16.gmra.mrb[28].mxu1 %vm269_vm1, %v823_v38 }
0x1488   :  { %1837 = vmatprep.mubr.msk.bf16.mxu1 %vm2101_vm3, %v2100_v3 }
0x14da   :  { %v1064_v39 = vpop.permute.xlu0 %1063 }
0x14db   :  { %1806 = vmatmul.mubr.msk.bf16.vlgmr.msra.gmra.mrb[32].mxu0 %vm110_vm0, %v1064_v39 }
0x14dc   :  { %1810 = vmatpush3.bf16.msra.mxu0 %v2422_v0  ;;  %1813 = vmatprep.mubr.msk.bf16.mxu0 %vm2101_vm3, %v2100_v3 }
0x14dd   :  { %1811 = vmatprep.subr.bf16.mxu0 %v2100_v3 }
0x14e0   :  { %1812 = vmatpush3.bf16.msra.mxu0 %v2431_v5 }
0x14e1   :  { %1817 = vmatprep.subr.bf16.mxu0 %v2100_v3 }
0x154a   :  { %v929_v1 = vpop.f32.mrb[20].mxu1 }
0x154b   :  { %v931_v40 = vpop.f32.mrb[21].mxu1  ;;  %v930_v59 = vadd.f32 %v929_v1, %v2414_v44 }
0x154c   :  { %v932_v42 = vpop.f32.mrb[22].mxu1 }
0x154d   :  { %v934_v45 = vpop.f32.mrb[23].mxu1  ;;  %v933_v18 = vadd.f32 %v932_v42, %v2414_v44 }
0x1552   :  { %v2487_v46 = vpop.f32.mrb[24].mxu1 }
0x1553   :  { %v939_v47 = vpop.f32.mrb[25].mxu1  ;;  %v938_v37 = vadd.f32 %v2487_v46, %v2414_v44 }
0x1554   :  { %v2489_v48 = vpop.f32.mrb[26].mxu1 }
0x1555   :  { %v942_v50 = vpop.f32.mrb[27].mxu1 }
0x155a   :  { %v2491_v55 = vpop.f32.mrb[28].mxu1 }
0x155b   :  { %v947_v56 = vpop.f32.mrb[29].mxu1 }
0x155c   :  { %v2493_v51 = vpop.f32.mrb[30].mxu1 }
0x155d   :  { %v2495_v52 = vpop.f32.mrb[31].mxu1 }
0x15ae   :  { %v1102_v60 = vpop.f32.mrb[32].mxu0 }
0x15af   :  { %v1108_v61 = vadd.f32 %v1102_v60, %v930_v59  ;;  %v1807_v8 = vpop.f32.mrb[33].mxu0 }
0x15b0   :  { %v1105_v62 = vpop.f32.mrb[34].mxu0 }
0x15b1   :  { %2037 = vtanh.f32 %v1108_v61  ;;  %v1808_v63 = vpop.f32.mrb[35].mxu0  ;;  %v1748_v26 = vmul.f32 -1.442695, %v1108_v61 }
0x15b3   :  { %2039 = vpow2.f32 %v1748_v26 }
0x15bb   :  { %v2038_v6 = vpop.eup %2037 }
0x15bc   :  { %1118 = vrot.lane.b32.xlu1 %v2038_v6, %s2098_s24 }
0x15bd   :  { %v2040_v9 = vpop.eup %2039 }
0x15be   :  { %v1112_v13 = vadd.f32 1.0, %v2040_v9 }
0x15c0   :  { %2041 = vrcp.f32 %v1112_v13 }
0x15ca   :  { %v2042_v41 = vpop.eup %2041 }
0x15cb   :  { %v1116_v25 = vmul.f32 %v2042_v41, %v2456_v54 }
0x162e   :  { %v1119_v14 = vpop.permute.xlu1 %1118 }
0x162f   :  { %v1121_v27 = vmul.f32 %v2042_v41, %v1119_v14 }
0x1631   :  { %1123 = vrot.lane.b32.xlu0 %v1121_v27, %s2099_s11 }
0x16a3   :  { %v1124_v28 = vpop.permute.xlu0 %1123 }
0x16a4   :  { %v1126_v15 = vadd.f32 %v1124_v28, %v1116_v25 }
0x16a6   :  { %2043 = vtanh.f32 %v1126_v15 }
0x16b0   :  { %v2044_v29 = vpop.eup %2043 }
0x16b1   :  { %1129 = vrot.lane.b32.xlu1 %v2044_v29, %s2098_s24 }
0x1723   :  { %v1130_v30 = vpop.permute.xlu1 %1129 }
0x1724   :  { %v1132_v31 = vmul.f32 %v2042_v41, %v1130_v30  ;;  %v941_v41 = vadd.f32 %v2489_v48, %v2414_v44 }
0x1726   :  { %v1133_v32 = vpack.c.bf16 %v1132_v31, %v1132_v31 }
0x1728   :  { %1135 = vrot.lane.b32.xlu0 %v1133_v32, %s2099_s11 }
0x179a   :  { %v1136_v10 = vpop.permute.xlu0 %1135 }
0x179b   :  { %1814 = vmatmul.mubr.msk.bf16.vlgmr.msra.gmra.mrb[36].mxu0 %vm110_vm0, %v1136_v10 }
0x179c   :  { %1818 = vmatpush3.bf16.msra.mxu0 %v2422_v0  ;;  %1821 = vmatprep.mubr.msk.bf16.mxu0 %vm2101_vm3, %v2100_v3 }
0x179d   :  { %1819 = vmatprep.subr.bf16.mxu0 %v2100_v3 }
0x17a0   :  { %1820 = vmatpush3.bf16.msra.mxu0 %v2431_v5 }
0x17a1   :  { %1825 = vmatprep.subr.bf16.mxu0 %v2100_v3 }
0x186e   :  { %v1174_v57 = vpop.f32.mrb[36].mxu0 }
0x186f   :  { %v1180_v58 = vadd.f32 %v1174_v57, %v933_v18  ;;  %v1815_v11 = vpop.f32.mrb[37].mxu0 }
0x1870   :  { %v1177_v53 = vpop.f32.mrb[38].mxu0 }
0x1871   :  { %2045 = vtanh.f32 %v1180_v58  ;;  %v1816_v54 = vpop.f32.mrb[39].mxu0  ;;  %v1750_v16 = vmul.f32 -1.442695, %v1180_v58 }
0x1873   :  { %2047 = vpow2.f32 %v1750_v16  ;;  %v946_v16 = vadd.f32 %v2491_v55, %v2414_v44 }
0x187b   :  { %v2046_v12 = vpop.eup %2045 }
0x187c   :  { %1190 = vrot.lane.b32.xlu1 %v2046_v12, %s2098_s24 }
0x187d   :  { %v2048_v49 = vpop.eup %2047 }
0x187e   :  { %v1184_v2 = vadd.f32 1.0, %v2048_v49 }
0x1880   :  { %2049 = vrcp.f32 %v1184_v2 }
0x188a   :  { %v2050_v19 = vpop.eup %2049 }
0x188b   :  { %v1188_v21 = vmul.f32 %v2050_v19, %v1126_v15 }
0x18ee   :  { %v1191_v4 = vpop.permute.xlu1 %1190 }
0x18ef   :  { %v1193_v20 = vmul.f32 %v2050_v19, %v1191_v4 }
0x18f1   :  { %1195 = vrot.lane.b32.xlu0 %v1193_v20, %s2099_s11 }
0x1963   :  { %v1196_v24 = vpop.permute.xlu0 %1195 }
0x1964   :  { %v1198_v23 = vadd.f32 %v1196_v24, %v1188_v21 }
0x1966   :  { %2051 = vtanh.f32 %v1198_v23 }
0x1970   :  { %v2052_v22 = vpop.eup %2051 }
0x1971   :  { %1201 = vrot.lane.b32.xlu1 %v2052_v22, %s2098_s24 }
0x19e3   :  { %v1202_v33 = vpop.permute.xlu1 %1201 }
0x19e4   :  { %v1204_v34 = vmul.f32 %v2050_v19, %v1202_v33 }
0x19e6   :  { %v1205_v35 = vpack.c.bf16 %v1204_v34, %v1204_v34 }
0x19e8   :  { %1207 = vrot.lane.b32.xlu0 %v1205_v35, %s2099_s11 }
0x1a5a   :  { %v1208_v36 = vpop.permute.xlu0 %1207 }
0x1a5b   :  { %1822 = vmatmul.mubr.msk.bf16.vlgmr.msra.gmra.mrb[40].mxu0 %vm110_vm0, %v1208_v36 }
0x1a5c   :  { %1826 = vmatpush3.bf16.msra.mxu0 %v2422_v0  ;;  %1829 = vmatprep.mubr.msk.bf16.mxu0 %vm2101_vm3, %v2100_v3 }
0x1a5d   :  { %1827 = vmatprep.subr.bf16.mxu0 %v2100_v3 }
0x1a60   :  { %1828 = vmatpush3.bf16.msra.mxu0 %v2431_v5 }
0x1a61   :  { %1841 = vmatprep.subr.bf16.mxu0 %v2100_v3 }
0x1b2e   :  { %v1246_v38 = vpop.f32.mrb[40].mxu0 }
0x1b2f   :  { %v1252_v39 = vadd.f32 %v1246_v38, %v938_v37  ;;  %v1823_v1 = vpop.f32.mrb[41].mxu0 }
0x1b30   :  { %v1249_v40 = vpop.f32.mrb[42].mxu0 }
0x1b31   :  { %2053 = vtanh.f32 %v1252_v39  ;;  %v1824_v42 = vpop.f32.mrb[43].mxu0  ;;  %v1752_v47 = vmul.f32 -1.442695, %v1252_v39  ;;  %v832_v39 = vrot.slane %v2409_v43, %v66_v17 }
0x1b33   :  { %2055 = vpow2.f32 %v1752_v47  ;;  %v951_v1 = vadd.f32 %v2495_v52, %v832_v39 }
0x1b3b   :  { %v2054_v45 = vpop.eup %2053 }
0x1b3c   :  { %1262 = vrot.lane.b32.xlu1 %v2054_v45, %s2098_s24 }
0x1b3d   :  { %v2056_v50 = vpop.eup %2055 }
0x1b3e   :  { %v1256_v56 = vadd.f32 1.0, %v2056_v50  ;;  %v1759_v50 = vmul.f32 -1.442695, %v951_v1 }
0x1b40   :  { %2057 = vrcp.f32 %v1256_v56 }
0x1b4a   :  { %v2058_v59 = vpop.eup %2057 }
0x1b4b   :  { %v1260_v46 = vmul.f32 %v2058_v59, %v1198_v23 }
0x1bae   :  { %v1263_v60 = vpop.permute.xlu1 %1262 }
0x1baf   :  { %v1265_v61 = vmul.f32 %v2058_v59, %v1263_v60 }
0x1bb1   :  { %1267 = vrot.lane.b32.xlu0 %v1265_v61, %s2099_s11 }
0x1c23   :  { %v1268_v8 = vpop.permute.xlu0 %1267 }
0x1c24   :  { %v1270_v62 = vadd.f32 %v1268_v8, %v1260_v46 }
0x1c26   :  { %2059 = vtanh.f32 %v1270_v62 }
0x1c30   :  { %v2060_v63 = vpop.eup %2059 }
0x1c31   :  { %1273 = vrot.lane.b32.xlu1 %v2060_v63, %s2098_s24 }
0x1ca3   :  { %v1274_v6 = vpop.permute.xlu1 %1273 }
0x1ca4   :  { %v1276_v26 = vmul.f32 %v2058_v59, %v1274_v6 }
0x1ca6   :  { %v1277_v9 = vpack.c.bf16 %v1276_v26, %v1276_v26 }
0x1ca8   :  { %1279 = vrot.lane.b32.xlu0 %v1277_v9, %s2099_s11 }
0x1d1a   :  { %v1280_v13 = vpop.permute.xlu0 %1279 }
0x1d1b   :  { %1830 = vmatmul.mubr.msk.bf16.vlgmr.msra.gmra.mrb[44].mxu0 %vm110_vm0, %v1280_v13 }
0x1d1c   :  { %1842 = vmatpush3.bf16.msra.mxu0 %v2422_v0  ;;  %1845 = vmatprep.mubr.msk.bf16.mxu0 %vm2101_vm3, %v2100_v3 }
0x1d1d   :  { %1843 = vmatprep.subr.bf16.mxu0 %v2100_v3 }
0x1d20   :  { %1844 = vmatpush3.bf16.msra.mxu0 %v2431_v5 }
0x1dee   :  { %v1318_v14 = vpop.f32.mrb[44].mxu0 }
0x1def   :  { %v1324_v27 = vadd.f32 %v1318_v14, %v941_v41  ;;  %v1831_v25 = vpop.f32.mrb[45].mxu0 }
0x1df0   :  { %v1321_v28 = vpop.f32.mrb[46].mxu0 }
0x1df1   :  { %2061 = vtanh.f32 %v1324_v27  ;;  %v1832_v15 = vpop.f32.mrb[47].mxu0  ;;  %v1754_v0 = vmul.f32 -1.442695, %v1324_v27 }
0x1df3   :  { %2063 = vpow2.f32 %v1754_v0 }
0x1dfb   :  { %v2062_v29 = vpop.eup %2061 }
0x1dfc   :  { %1334 = vrot.lane.b32.xlu1 %v2062_v29, %s2098_s24  ;;  %v2102_v29 = vmov 0.0|0.0  }
0x1dfd   :  { %v2064_v30 = vpop.eup %2063  ;;  %1871 = vmatprep.subr.bf16.mxu1 %v2102_v29  ;;  %1877 = vmatprep.subr.bf16.mxu0 %v2102_v29 }
0x1dfe   :  { %v1328_v31 = vadd.f32 1.0, %v2064_v30 }
0x1e00   :  { %2065 = vrcp.f32 %v1328_v31  ;;  %v49_v31 = vld [vmem:[%s2603_s2 + $0x70] sm:$0xff] }
0x1e0a   :  { %v2066_v32 = vpop.eup %2065 }
0x1e0b   :  { %v1332_v48 = vmul.f32 %v2066_v32, %v1270_v62  ;;  %v949_v62 = vadd.f32 %v2493_v51, %v2414_v44  ;;  %v47_v44 = vld [vmem:[%s2603_s2 + $0x50] sm:$0xff]  ;;  %v48_v51 = vld [vmem:[%s2603_s2 + $0x60] sm:$0xff] }
0x1e0c   :  { %v1872_v0 = vpack.c.bf16 %v48_v51, %v47_v44 }
0x1e6e   :  { %v1335_v10 = vpop.permute.xlu1 %1334 }
0x1e6f   :  { %v1337_v5 = vmul.f32 %v2066_v32, %v1335_v10 }
0x1e71   :  { %1339 = vrot.lane.b32.xlu0 %v1337_v5, %s2099_s11 }
0x1ee3   :  { %v1340_v18 = vpop.permute.xlu0 %1339 }
0x1ee4   :  { %v1342_v57 = vadd.f32 %v1340_v18, %v1332_v48  ;;  %v43_v18 = vld [vmem:[%s2603_s2 + $0x10] sm:$0xff] }
0x1ee6   :  { %2067 = vtanh.f32 %v1342_v57 }
0x1ef0   :  { %v2068_v58 = vpop.eup %2067 }
0x1ef1   :  { %1345 = vrot.lane.b32.xlu1 %v2068_v58, %s2098_s24  ;;  %v45_v58 = vld [vmem:[%s2603_s2 + $0x30] sm:$0xff] }
0x1f63   :  { %v1346_v11 = vpop.permute.xlu1 %1345 }
0x1f64   :  { %v1348_v53 = vmul.f32 %v2066_v32, %v1346_v11  ;;  %v50_v32 = vld [vmem:[%s2603_s2 + $0x80] sm:$0xff] }
0x1f65   :  { %v1875_v5 = vpack.c.bf16 %v50_v32, %v49_v31 }
0x1f66   :  { %v1349_v54 = vpack.c.bf16 %v1348_v53, %v1348_v53  ;;  %v46_v53 = vld [vmem:[%s2603_s2 + $0x40] sm:$0xff] }
0x1f68   :  { %1351 = vrot.lane.b32.xlu0 %v1349_v54, %s2099_s11  ;;  %v1881_v54 = vpack.c.bf16 %v46_v53, %v45_v58 }
0x1fda   :  { %v1352_v12 = vpop.permute.xlu0 %1351 }
0x1fdb   :  { %1838 = vmatmul.mubr.msk.bf16.vlgmr.msra.gmra.mrb[32].mxu1 %vm110_vm0, %v1352_v12 }
0x1fdc   :  { %1857 = vmatprep.mubr.msk.f32.mxu1 %vm2101_vm3, %v2100_v3  ;;  %1873 = vmatpush3.bf16.msra.mxu1 %v1872_v0 }
0x1fdd   :  { %1874 = vmatprep.subr.bf16.mxu1 %v2102_v29 }
0x1fe0   :  { %1876 = vmatpush3.bf16.msra.mxu1 %v1875_v5 }
0x20ae   :  { %v1390_v49 = vpop.f32.mrb[32].mxu1 }
0x20af   :  { %v1396_v2 = vadd.f32 %v1390_v49, %v946_v16  ;;  %v1839_v19 = vpop.f32.mrb[33].mxu1 }
0x20b0   :  { %v1393_v4 = vpop.f32.mrb[34].mxu1 }
0x20b1   :  { %2069 = vtanh.f32 %v1396_v2  ;;  %v1840_v20 = vpop.f32.mrb[35].mxu1  ;;  %v1756_v24 = vmul.f32 -1.442695, %v1396_v2 }
0x20b3   :  { %2071 = vpow2.f32 %v1756_v24 }
0x20bb   :  { %v2070_v21 = vpop.eup %2069 }
0x20bc   :  { %1406 = vrot.lane.b32.xlu1 %v2070_v21, %s2098_s24 }
0x20bd   :  { %v2072_v23 = vpop.eup %2071 }
0x20be   :  { %v1400_v22 = vadd.f32 1.0, %v2072_v23 }
0x20c0   :  { %2073 = vrcp.f32 %v1400_v22  ;;  %v42_v22 = vld [vmem:[%s2603_s2 + $0x2] ss:$0 sm:$0xff] }
0x20ca   :  { %v2074_v33 = vpop.eup %2073 }
0x20cb   :  { %v1404_v55 = vmul.f32 %v2074_v33, %v1342_v57  ;;  %v44_v57 = vld [vmem:[%s2603_s2 + $0x20] sm:$0xff] }
0x20cc   :  { %v1878_v11 = vpack.c.bf16 %v44_v57, %v43_v18 }
0x212e   :  { %v1407_v34 = vpop.permute.xlu1 %1406 }
0x212f   :  { %v1409_v35 = vmul.f32 %v2074_v33, %v1407_v34 }
0x2131   :  { %1411 = vrot.lane.b32.xlu0 %v1409_v35, %s2099_s11 }
0x21a3   :  { %v1412_v36 = vpop.permute.xlu0 %1411 }
0x21a4   :  { %v1414_v37 = vadd.f32 %v1412_v36, %v1404_v55 }
0x21a6   :  { %2075 = vtanh.f32 %v1414_v37 }
0x21a7   :  { %2077 = vtanh.f32 %v951_v1 }
0x21a8   :  { %2079 = vpow2.f32 %v1759_v50 }
0x21b0   :  { %v2076_v38 = vpop.eup %2075 }
0x21b1   :  { %1417 = vrot.lane.b32.xlu1 %v2076_v38, %s2098_s24  ;;  %v2078_v47 = vpop.eup %2077 }
0x21b2   :  { %v2080_v56 = vpop.eup %2079 }
0x21b3   :  { %v1496_v59 = vadd.f32 1.0, %v2080_v56 }
0x21b5   :  { %2081 = vrcp.f32 %v1496_v59 }
0x21bf   :  { %v2082_v7 = vpop.eup %2081 }
0x21c0   :  { %v1500_v52 = vmul.f32 0.0, %v2082_v7 }
0x2223   :  { %v1418_v40 = vpop.permute.xlu1 %1417 }
0x2224   :  { %v1420_v42 = vmul.f32 %v2074_v33, %v1418_v40 }
0x2226   :  { %v1421_v45 = vpack.c.bf16 %v1420_v42, %v1420_v42 }
0x2228   :  { %1423 = vrot.lane.b32.xlu0 %v1421_v45, %s2099_s11 }
0x222c   :  { %1502 = vrot.lane.b32.xlu0 %v2078_v47, %s2098_s24 }
0x229a   :  { %v1424_v60 = vpop.permute.xlu0 %1423 }
0x229b   :  { %1846 = vmatmul.mubr.msk.bf16.vlgmr.msra.gmra.mrb[48].mxu0 %vm110_vm0, %v1424_v60 }
0x229c   :  { %1868 = vmatprep.mubr.msk.f32.mxu0 %vm2101_vm3, %v2100_v3  ;;  %1879 = vmatpush3.bf16.msra.mxu0 %v1878_v11 }
0x229d   :  { %1880 = vmatprep.subr.bf16.mxu0 %v2102_v29 }
0x229e   :  { %v1503_v17 = vpop.permute.xlu0 %1502 }
0x229f   :  { %v1505_v43 = vmul.f32 %v2082_v7, %v1503_v17 }
0x22a0   :  { %1882 = vmatpush3.bf16.msra.mxu0 %v1881_v54 }
0x22a1   :  { %1507 = vrot.lane.b32.xlu0 %v1505_v43, %s2099_s11 }
0x2313   :  { %v1508_v61 = vpop.permute.xlu0 %1507 }
0x2314   :  { %v1510_v46 = vadd.f32 %v1508_v61, %v1500_v52 }
0x2316   :  { %2083 = vtanh.f32 %v1510_v46 }
0x2320   :  { %v2084_v8 = vpop.eup %2083 }
0x2321   :  { %1513 = vrot.lane.b32.xlu0 %v2084_v8, %s2098_s24 }
0x236e   :  { %v1462_v63 = vpop.f32.mrb[48].mxu0 }
0x236f   :  { %v1468_v6 = vadd.f32 %v1462_v63, %v949_v62  ;;  %v1847_v26 = vpop.f32.mrb[49].mxu0 }
0x2370   :  { %v1465_v9 = vpop.f32.mrb[50].mxu0 }
0x2371   :  { %2085 = vtanh.f32 %v1468_v6  ;;  %v1848_v3 = vpop.f32.mrb[51].mxu0  ;;  %v1758_v41 = vmul.f32 -1.442695, %v1468_v6 }
0x2373   :  { %2087 = vpow2.f32 %v1758_v41 }
0x237b   :  { %v2086_v13 = vpop.eup %2085 }
0x237c   :  { %1478 = vrot.lane.b32.xlu1 %v2086_v13, %s2098_s24 }
0x237d   :  { %v2088_v14 = vpop.eup %2087 }
0x237e   :  { %v1472_v27 = vadd.f32 1.0, %v2088_v14 }
0x2380   :  { %2089 = vrcp.f32 %v1472_v27 }
0x238a   :  { %v2090_v25 = vpop.eup %2089 }
0x238b   :  { %v1476_v30 = vmul.f32 %v2090_v25, %v1414_v37 }
0x2393   :  { %v1514_v16 = vpop.permute.xlu0 %1513 }
0x2394   :  { %v1516_v49 = vmul.f32 %v2082_v7, %v1514_v16 }
0x23ee   :  { %v1479_v28 = vpop.permute.xlu1 %1478 }
0x23ef   :  { %v1481_v15 = vmul.f32 %v2090_v25, %v1479_v28 }
0x23f1   :  { %1483 = vrot.lane.b32.xlu1 %v1481_v15, %s2099_s11 }
0x2463   :  { %v1484_v10 = vpop.permute.xlu1 %1483 }
0x2464   :  { %v1486_v48 = vadd.f32 %v1484_v10, %v1476_v30 }
0x2466   :  { %2091 = vtanh.f32 %v1486_v48 }
0x2470   :  { %v2092_v12 = vpop.eup %2091 }
0x2471   :  { %1489 = vrot.lane.b32.xlu1 %v2092_v12, %s2098_s24 }
0x2475   :  { %1518 = vrot.lane.b32.xlu1 %v1516_v49, %s2099_s11 }
0x24e3   :  { %v1490_v2 = vpop.permute.xlu1 %1489 }
0x24e4   :  { %v1492_v19 = vmul.f32 %v2090_v25, %v1490_v2 }
0x24e6   :  { %1593 = vrot.lane.b32.xlu0 %v1492_v19, %s2099_s11 }
0x24e7   :  { %v1519_v4 = vpop.permute.xlu1 %1518 }
0x24e8   :  { %1858 = vmatmul.mubr.msk.f32.vlgmr.msra.gmra.mrb[36].mxu1 %vm110_vm0, %v1519_v4 }
0x2558   :  { %v1594_v20 = vpop.permute.xlu0 %1593 }
0x2559   :  { %1869 = vmatmul.mubr.msk.f32.vlgmr.msra.gmra.mrb[52].mxu0 %vm110_vm0, %v1594_v20 }
0x25bb   :  { %v1588_v21 = vpop.f32.mrb[36].mxu1 }
0x25bc   :  { %v1859_v24 = vpop.f32.mrb[37].mxu1 }
0x262c   :  { %v1663_v23 = vpop.f32.mrb[52].mxu0 }
0x262d   :  { %v1664_v33 = vadd.f32 %v1663_v23, %v1588_v21  ;;  %v1870_v34 = vpop.f32.mrb[53].mxu0 }
0x262f   :  { %v1667_v35 = vadd.f32 %v1664_v33, %v42_v22 }
0x2631   :  { %v1669_v55 = vsel %vm1668_vm4, %v1667_v35, -inf }
0x2632   :  { %1670 = vmax.xlane.f32.xlu1 %v1669_v55 }
0x26bf   :  { %v1671_v36 = vpop.xlane.xlu1 %1670 }
0x26c0   :  { %v1672_v37 = vsub.f32 %v1667_v35, %v1671_v36 }
0x26c2   :  { %v1673_v38 = vmul.f32 1.442695, %v1672_v37 }
0x26c4   :  { %2093 = vpow2.f32 %v1673_v38 }
0x26ce   :  { %v2094_v39 = vpop.eup %2093 }
0x26cf   :  { %v1675_v1 = vsel %vm1668_vm4, %v2094_v39, 0.0 }
0x26d0   :  { %1676 = vadd.xlane.f32.xlu0 %v1675_v1 }
0x275d   :  { %v1677_v40 = vpop.xlane.xlu0 %1676 }
0x275e   :  { %2095 = vlog2.f32 %v1677_v40 }
0x2768   :  { %v2096_v42 = vpop.eup %2095 }
0x2769   :  { %v1679_v45 = vmul.f32 0.6931472, %v2096_v42 }
0x276b   :  { %v1680_v47 = vsub.f32 %v1672_v37, %v1679_v45 }
0x276d   :  { %1681 = vst.msk [vmem:[%s2604_s3] sm:$0xff] %vm1668_vm4, %v1680_v47 }

</bundles_post_ra>
